<compile_context>
chip_gen: v7x
topology: tpu7x:2x2x1
jax: 0.10.0
libtpu: 0.0.40
codegen_flags: <defaults>
</compile_context>

<pallas_src>
import math
from functools import partial

import jax
import jax.numpy as jnp
from jax.experimental import pallas as pl
from jax.experimental.pallas import tpu as pltpu


# --------------------------------------------------------------------------
# Pallas kernel: single-layer LSTM over [x ; prev_reads]
# --------------------------------------------------------------------------
def lstm_kernel(x_ref, pr_ref, wih_ref, whh_ref, b_ref, hc0_ref,
                hc_out_ref, seq_ref):
    """LSTM recurrence over the concatenated sequence; returns packed [h | c].

    x_ref    : (T1, D)     VMEM
    pr_ref   : (T2, D)     VMEM
    wih_ref  : (D, 4H)     VMEM  (W_ih^T, gate columns ordered [f, i, g, o])
    whh_ref  : (H, 4H)     VMEM  (W_hh^T, same column order)
    b_ref    : (1, 4H)     VMEM  (b_ih + b_hh, same column order)
    hc0_ref  : (1, 2H)     VMEM  packed [h0 | c0]
    hc_out   : (1, 2H)     VMEM  packed [h_T | c_T] (aliased onto hc0)
    seq_ref  : (T1+T2, D)  VMEM scratch
    """
    H = hc0_ref.shape[1] // 2
    T1 = x_ref.shape[0]
    T2 = pr_ref.shape[0]
    T = T1 + T2

    # Merge the two inputs into one contiguous block so the hoisted input
    # projection is a single (T, D) @ (D, 4H) MXU op, bias folded in.
    seq_ref[0:T1, :] = x_ref[...]
    seq_ref[T1:T, :] = pr_ref[...]
    xw = jnp.dot(seq_ref[...], wih_ref[...],
                 preferred_element_type=jnp.float32) + b_ref[...]

    w_hh = whh_ref[...]
    h = hc0_ref[:, 0:H]
    c = hc0_ref[:, H:2 * H]

    # TODO(synk): if the bundle dump shows Mosaic re-pushing W_hh into the MXU
    # every step, switch the recurrence matmul to explicit
    # pltpu.matmul_push_rhs / matmul_acc_lhs / matmul_pop to hold the RHS in
    # the systolic array across the 16 dependent steps.
    def cell(xw_row, h, c):
        gates = xw_row + jnp.dot(h, w_hh, preferred_element_type=jnp.float32)
        sig = jax.nn.sigmoid(gates)              # one EUP op covers f, i, o
        f_g = sig[:, 0 * H:1 * H]                # f lives in lanes 0..H-1
        i_g = sig[:, 1 * H:2 * H]
        o_g = sig[:, 3 * H:4 * H]
        g_g = jnp.tanh(gates[:, 2 * H:3 * H])    # narrow tanh: g gate only
        c_new = f_g * c + i_g * g_g
        h_new = o_g * jnp.tanh(c_new)
        return h_new, c_new

    # Fully unrolled recurrence (T is small & static): the LLO scheduler can
    # overlap the next step's MXU push with this step's VPU/EUP tail.
    for t in range(T):
        h, c = cell(xw[t:t + 1, :], h, c)

    hc_out_ref[:, 0:H] = h
    hc_out_ref[:, H:2 * H] = c


# --------------------------------------------------------------------------
# Jitted wrappers
# --------------------------------------------------------------------------
@partial(jax.jit, donate_argnums=(5,))   # donate hc0 -> in-place state update
def _lstm_forward(x, prev_reads, wih_t, whh_t, bias, hc0):
    T1, D = x.shape
    T2 = prev_reads.shape[0]
    H2 = hc0.shape[1]          # 2 * ctrl_dim
    H = H2 // 2

    hc = pl.pallas_call(
        lstm_kernel,
        out_shape=jax.ShapeDtypeStruct((1, H2), jnp.float32),
        grid=(1,),
        in_specs=[
            pl.BlockSpec((T1, D), lambda i: (0, 0)),
            pl.BlockSpec((T2, D), lambda i: (0, 0)),
            pl.BlockSpec((D, 4 * H), lambda i: (0, 0)),
            pl.BlockSpec((H, 4 * H), lambda i: (0, 0)),
            pl.BlockSpec((1, 4 * H), lambda i: (0, 0)),
            pl.BlockSpec((1, H2), lambda i: (0, 0)),
        ],
        out_specs=pl.BlockSpec((1, H2), lambda i: (0, 0)),
        scratch_shapes=[pltpu.VMEM((T1 + T2, D), jnp.float32)],
        # hc0 is dead after the call -> its buffer is reused for the output
        input_output_aliases={5: 0},
        compiler_params=pltpu.CompilerParams(
            dimension_semantics=("arbitrary",)),
    )(x, prev_reads, wih_t, whh_t, bias, hc0)

    # split inside jit (fused; avoids two extra eager dispatches per forward)
    return hc, hc[:, :H], hc[:, H:]


@jax.jit
def _output_forward(reads, w_out_t, b_out2):
    # Perf review: (1,R)@(R,O) ~ 2 KFLOP is far below pallas_call fixed cost
    # (dispatch + pipeline prologue + extra DMAs), so the output projection
    # runs as a plain XLA dot under jit instead of a second Pallas kernel.
    r = reads.reshape(1, -1).astype(jnp.float32)
    return jnp.dot(r, w_out_t, preferred_element_type=jnp.float32) + b_out2


# --------------------------------------------------------------------------
# Python-side Controller2
# --------------------------------------------------------------------------
class Controller2:
    def __init__(self, input_dim, ctrl_dim, output_dim, read_data_size, key):
        self.input_size = input_dim
        self.ctrl_dim = ctrl_dim
        self.output_size = output_dim
        self.read_data_size = read_data_size

        ks = jax.random.split(key, 8)
        k_lstm = 1.0 / math.sqrt(ctrl_dim)

        # nn.LSTM(input_dim, ctrl_dim) parameters (PyTorch layout, [i,f,g,o])
        self.w_ih = jax.random.uniform(ks[0], (4 * ctrl_dim, input_dim),
                                       jnp.float32, -k_lstm, k_lstm)
        self.w_hh = jax.random.uniform(ks[1], (4 * ctrl_dim, ctrl_dim),
                                       jnp.float32, -k_lstm, k_lstm)
        self.b_ih = jax.random.uniform(ks[2], (4 * ctrl_dim,),
                                       jnp.float32, -k_lstm, k_lstm)
        self.b_hh = jax.random.uniform(ks[3], (4 * ctrl_dim,),
                                       jnp.float32, -k_lstm, k_lstm)

        # nn.Linear(read_data_size, output_dim) with kaiming_uniform weight
        bound_w = math.sqrt(6.0 / read_data_size)
        self.w_out = jax.random.uniform(ks[4], (output_dim, read_data_size),
                                        jnp.float32, -bound_w, bound_w)
        k_out = 1.0 / math.sqrt(read_data_size)
        self.b_out = jax.random.uniform(ks[5], (output_dim,),
                                        jnp.float32, -k_out, k_out)

        # h_bias_fc / c_bias_fc = nn.Linear(1, ctrl_dim); only their biases
        # matter for reset() since the input is [[0.0]].
        k1 = 1.0
        self.h_bias = jax.random.uniform(ks[6], (ctrl_dim,), jnp.float32, -k1, k1)
        self.c_bias = jax.random.uniform(ks[7], (ctrl_dim,), jnp.float32, -k1, k1)

        # ---- precomputed kernel-friendly parameter forms (done ONCE) ----
        # gate-column permutation [i,f,g,o] -> [f,i,g,o] so the f gate (the
        # one multiplied with c) lands in lanes 0..H-1 inside the kernel.
        H = ctrl_dim
        perm = jnp.concatenate([jnp.arange(H, 2 * H),        # f
                                jnp.arange(0, H),             # i
                                jnp.arange(2 * H, 3 * H),     # g
                                jnp.arange(3 * H, 4 * H)])    # o
        self.wih_t = jnp.asarray(self.w_ih.T)[:, perm]                  # (D, 4H)
        self.whh_t = jnp.asarray(self.w_hh.T)[:, perm]                  # (H, 4H)
        self.bias2 = jnp.asarray((self.b_ih + self.b_hh)[perm][None, :])  # (1, 4H)
        self.wout_t = jnp.asarray(self.w_out.T)                         # (R, O)
        self.bout2 = jnp.asarray(self.b_out[None, :])                    # (1, O)

        self.reset()

    def reset(self, batch_size=1):
        # h_bias_fc([[0.0]]) == bias of the layer; state stored packed [h | c].
        # NOTE: like PyTorch nn.LSTM with an unbatched (T, D) input, forward()
        # requires a (1, ctrl_dim) state, i.e. batch_size == 1.
        hc = jnp.concatenate([self.h_bias, self.c_bias])[None, :]
        self.hc_state = jnp.tile(hc, (batch_size, 1))
        self.h_state = self.hc_state[:, :self.ctrl_dim]
        self.c_state = self.hc_state[:, self.ctrl_dim:]

    # ---------------- forward: LSTM over cat([x, prev_reads], dim=0) ---------
    def forward(self, x, prev_reads):
        self.hc_state, self.h_state, self.c_state = _lstm_forward(
            x.astype(jnp.float32), prev_reads.astype(jnp.float32),
            self.wih_t, self.whh_t, self.bias2, self.hc_state)
        return self.h_state, self.c_state

    # ---------------- output: Linear(read_data_size -> output_dim) -----------
    def output(self, reads):
        return _output_forward(reads, self.wout_t, self.bout2)


# --------------------------------------------------------------------------
# Pure-JAX reference (for correctness check; uses original PyTorch layout)
# --------------------------------------------------------------------------
def lstm_reference(seq, w_ih, w_hh, b_ih, b_hh, h0, c0):
    H = h0.shape[1]
    h, c = h0, c0
    for t in range(seq.shape[0]):
        gates = seq[t:t + 1] @ w_ih.T + h @ w_hh.T + b_ih + b_hh
        i = jax.nn.sigmoid(gates[:, 0 * H:1 * H])
        f = jax.nn.sigmoid(gates[:, 1 * H:2 * H])
        g = jnp.tanh(gates[:, 2 * H:3 * H])
        o = jax.nn.sigmoid(gates[:, 3 * H:4 * H])
        c = f * c + i * g
        h = o * jnp.tanh(c)
    return h, c


if __name__ == "__main__":
    INPUT_DIM = 32
    CTRL_DIM = 32
    OUTPUT_DIM = 16
    READ_DATA_SIZE = 64
    SEQ = 8

    key = jax.random.PRNGKey(0)
    k_params, k_x, k_r, k_reads = jax.random.split(key, 4)

    ctrl = Controller2(INPUT_DIM, CTRL_DIM, OUTPUT_DIM, READ_DATA_SIZE, k_params)

    x = jax.random.normal(k_x, (SEQ, INPUT_DIM), jnp.float32)
    prev_reads = jax.random.normal(k_r, (SEQ, INPUT_DIM), jnp.float32)
    reads = jax.random.normal(k_reads, (READ_DATA_SIZE,), jnp.float32)

    # Snapshot the initial state BEFORE forward (hc_state buffer is donated).
    h0 = jnp.copy(ctrl.hc_state[:, :CTRL_DIM])
    c0 = jnp.copy(ctrl.hc_state[:, CTRL_DIM:])

    h, c = ctrl.forward(x, prev_reads)
    out = ctrl.output(reads)
    jax.block_until_ready((h, c, out))

    # correctness check against pure-JAX reference
    seq = jnp.concatenate([x, prev_reads], axis=0)
    h_ref, c_ref = lstm_reference(seq, ctrl.w_ih, ctrl.w_hh,
                                  ctrl.b_ih, ctrl.b_hh, h0, c0)
    out_ref = reads.reshape(1, READ_DATA_SIZE) @ ctrl.w_out.T + ctrl.b_out

    assert h.shape == (1, CTRL_DIM) and c.shape == (1, CTRL_DIM)
    assert out.shape == (1, OUTPUT_DIM)
    assert jnp.allclose(h, h_ref, atol=1e-5, rtol=1e-5)
    assert jnp.allclose(c, c_ref, atol=1e-5, rtol=1e-5)
    assert jnp.allclose(out, out_ref, atol=1e-5, rtol=1e-5)

    print("KERNEL_OK")
</pallas_src>

<mosaic_0001>
module attributes {stable_mosaic.version = 11 : i64} {
  func.func @lstm_kernel(%arg0: i32, %arg1: memref<8x32xf32, #tpu.memory_space<vmem>>, %arg2: memref<8x32xf32, #tpu.memory_space<vmem>>, %arg3: memref<32x128xf32, #tpu.memory_space<vmem>>, %arg4: memref<32x128xf32, #tpu.memory_space<vmem>>, %arg5: memref<1x128xf32, #tpu.memory_space<vmem>>, %arg6: memref<1x64xf32, #tpu.memory_space<vmem>>, %arg7: memref<1x64xf32, #tpu.memory_space<vmem>>, %arg8: memref<16x32xf32, #tpu.memory_space<vmem>>) attributes {dimension_semantics = [#tpu.dimension_semantics<arbitrary>], iteration_bounds = array<i64: 1>, scalar_prefetch = 0 : i64, scratch_operands = 1 : i64, tpu.core_type = #tpu.core_type<tc>, window_params = [{pipeline_mode = #tpu.pipeline_mode<synchronous>, transform_indices = @transform_0, window_bounds = array<i64: 8, 32>}, {pipeline_mode = #tpu.pipeline_mode<synchronous>, transform_indices = @transform_1, window_bounds = array<i64: 8, 32>}, {pipeline_mode = #tpu.pipeline_mode<synchronous>, transform_indices = @transform_2, window_bounds = array<i64: 32, 128>}, {pipeline_mode = #tpu.pipeline_mode<synchronous>, transform_indices = @transform_3, window_bounds = array<i64: 32, 128>}, {pipeline_mode = #tpu.pipeline_mode<synchronous>, transform_indices = @transform_4, window_bounds = array<i64: 1, 128>}, {pipeline_mode = #tpu.pipeline_mode<synchronous>, transform_indices = @transform_5, window_bounds = array<i64: 1, 64>}, {pipeline_mode = #tpu.pipeline_mode<synchronous>, transform_indices = @transform_6, window_bounds = array<i64: 1, 64>}]} {
    %c0 = arith.constant 0 : index
    %c0_0 = arith.constant 0 : index
    %0 = vector.load %arg1[%c0, %c0_0] : memref<8x32xf32, #tpu.memory_space<vmem>>, vector<8x32xf32>
    %c0_1 = arith.constant 0 : index
    %c0_2 = arith.constant 0 : index
    %1 = vector.load %arg8[%c0_1, %c0_2] : memref<16x32xf32, #tpu.memory_space<vmem>>, vector<8x32xf32>
    tpu.vector_store %arg8[%c0_1, %c0_2], %0 {strides = array<i32>} : memref<16x32xf32, #tpu.memory_space<vmem>>, vector<8x32xf32>,
    %c0_3 = arith.constant 0 : index
    %c0_4 = arith.constant 0 : index
    %2 = vector.load %arg2[%c0_3, %c0_4] : memref<8x32xf32, #tpu.memory_space<vmem>>, vector<8x32xf32>
    %c8 = arith.constant 8 : index
    %c0_5 = arith.constant 0 : index
    %3 = vector.load %arg8[%c8, %c0_5] : memref<16x32xf32, #tpu.memory_space<vmem>>, vector<8x32xf32>
    tpu.vector_store %arg8[%c8, %c0_5], %2 {strides = array<i32>} : memref<16x32xf32, #tpu.memory_space<vmem>>, vector<8x32xf32>,
    %c0_6 = arith.constant 0 : index
    %c0_7 = arith.constant 0 : index
    %4 = vector.load %arg8[%c0_6, %c0_7] : memref<16x32xf32, #tpu.memory_space<vmem>>, vector<16x32xf32>
    %c0_8 = arith.constant 0 : index
    %c0_9 = arith.constant 0 : index
    %5 = vector.load %arg3[%c0_8, %c0_9] : memref<32x128xf32, #tpu.memory_space<vmem>>, vector<32x128xf32>
    %cst = arith.constant dense<0.000000e+00> : vector<16x128xf32>
    %6 = tpu.matmul %4, %5, %cst {dimension_numbers = #tpu.dot_dimension_numbers<[1], [0], [0], [1], [0, 0, 1, 1], [], []>} : vector<16x32xf32>, vector<32x128xf32>, vector<16x128xf32> -> vector<16x128xf32>
    %c0_10 = arith.constant 0 : index
    %c0_11 = arith.constant 0 : index
    %7 = vector.load %arg5[%c0_10, %c0_11] : memref<1x128xf32, #tpu.memory_space<vmem>>, vector<1x128xf32>
    %8 = vector.broadcast %7 : vector<1x128xf32> to vector<16x128xf32>
    %9 = arith.addf %6, %8 : vector<16x128xf32>
    %c0_12 = arith.constant 0 : index
    %c0_13 = arith.constant 0 : index
    %10 = vector.load %arg4[%c0_12, %c0_13] : memref<32x128xf32, #tpu.memory_space<vmem>>, vector<32x128xf32>
    %c0_14 = arith.constant 0 : index
    %c0_15 = arith.constant 0 : index
    %11 = vector.load %arg6[%c0_14, %c0_15] : memref<1x64xf32, #tpu.memory_space<vmem>>, vector<1x32xf32>
    %c0_16 = arith.constant 0 : index
    %c32 = arith.constant 32 : index
    %12 = vector.load %arg6[%c0_16, %c32] : memref<1x64xf32, #tpu.memory_space<vmem>>, vector<1x32xf32>
    %13 = vector.extract_strided_slice %9 {offsets = [0, 0], sizes = [1, 128], strides = [1, 1]} : vector<16x128xf32> to vector<1x128xf32>
    %cst_17 = arith.constant dense<0.000000e+00> : vector<1x128xf32>
    %14 = tpu.matmul %11, %10, %cst_17 {dimension_numbers = #tpu.dot_dimension_numbers<[1], [0], [0], [1], [0, 0, 1, 1], [], []>} : vector<1x32xf32>, vector<32x128xf32>, vector<1x128xf32> -> vector<1x128xf32>
    %15 = arith.addf %13, %14 : vector<1x128xf32>
    %16 = arith.negf %15 : vector<1x128xf32>
    %17 = math.exp %16 : vector<1x128xf32>
    %cst_18 = arith.constant 1.000000e+00 : f32
    %18 = vector.broadcast %cst_18 : f32 to vector<1x128xf32>
    %19 = arith.addf %18, %17 : vector<1x128xf32>
    %20 = arith.divf %18, %19 : vector<1x128xf32>
    %21 = vector.extract_strided_slice %20 {offsets = [0, 0], sizes = [1, 32], strides = [1, 1]} : vector<1x128xf32> to vector<1x32xf32>
    %22 = vector.extract_strided_slice %20 {offsets = [0, 32], sizes = [1, 32], strides = [1, 1]} : vector<1x128xf32> to vector<1x32xf32>
    %23 = vector.extract_strided_slice %20 {offsets = [0, 96], sizes = [1, 32], strides = [1, 1]} : vector<1x128xf32> to vector<1x32xf32>
    %24 = vector.extract_strided_slice %15 {offsets = [0, 64], sizes = [1, 32], strides = [1, 1]} : vector<1x128xf32> to vector<1x32xf32>
    %25 = math.tanh %24 : vector<1x32xf32>
    %26 = arith.mulf %21, %12 : vector<1x32xf32>
    %27 = arith.mulf %22, %25 : vector<1x32xf32>
    %28 = arith.addf %26, %27 : vector<1x32xf32>
    %29 = math.tanh %28 : vector<1x32xf32>
    %30 = arith.mulf %23, %29 : vector<1x32xf32>
    %31 = vector.extract_strided_slice %9 {offsets = [1, 0], sizes = [1, 128], strides = [1, 1]} : vector<16x128xf32> to vector<1x128xf32>
    %cst_19 = arith.constant dense<0.000000e+00> : vector<1x128xf32>
    %32 = tpu.matmul %30, %10, %cst_19 {dimension_numbers = #tpu.dot_dimension_numbers<[1], [0], [0], [1], [0, 0, 1, 1], [], []>} : vector<1x32xf32>, vector<32x128xf32>, vector<1x128xf32> -> vector<1x128xf32>
    %33 = arith.addf %31, %32 : vector<1x128xf32>
    %34 = arith.negf %33 : vector<1x128xf32>
    %35 = math.exp %34 : vector<1x128xf32>
    %cst_20 = arith.constant 1.000000e+00 : f32
    %36 = vector.broadcast %cst_20 : f32 to vector<1x128xf32>
    %37 = arith.addf %36, %35 : vector<1x128xf32>
    %38 = arith.divf %36, %37 : vector<1x128xf32>
    %39 = vector.extract_strided_slice %38 {offsets = [0, 0], sizes = [1, 32], strides = [1, 1]} : vector<1x128xf32> to vector<1x32xf32>
    %40 = vector.extract_strided_slice %38 {offsets = [0, 32], sizes = [1, 32], strides = [1, 1]} : vector<1x128xf32> to vector<1x32xf32>
    %41 = vector.extract_strided_slice %38 {offsets = [0, 96], sizes = [1, 32], strides = [1, 1]} : vector<1x128xf32> to vector<1x32xf32>
    %42 = vector.extract_strided_slice %33 {offsets = [0, 64], sizes = [1, 32], strides = [1, 1]} : vector<1x128xf32> to vector<1x32xf32>
    %43 = math.tanh %42 : vector<1x32xf32>
    %44 = arith.mulf %39, %28 : vector<1x32xf32>
    %45 = arith.mulf %40, %43 : vector<1x32xf32>
    %46 = arith.addf %44, %45 : vector<1x32xf32>
    %47 = math.tanh %46 : vector<1x32xf32>
    %48 = arith.mulf %41, %47 : vector<1x32xf32>
    %49 = vector.extract_strided_slice %9 {offsets = [2, 0], sizes = [1, 128], strides = [1, 1]} : vector<16x128xf32> to vector<1x128xf32>
    %cst_21 = arith.constant dense<0.000000e+00> : vector<1x128xf32>
    %50 = tpu.matmul %48, %10, %cst_21 {dimension_numbers = #tpu.dot_dimension_numbers<[1], [0], [0], [1], [0, 0, 1, 1], [], []>} : vector<1x32xf32>, vector<32x128xf32>, vector<1x128xf32> -> vector<1x128xf32>
    %51 = arith.addf %49, %50 : vector<1x128xf32>
    %52 = arith.negf %51 : vector<1x128xf32>
    %53 = math.exp %52 : vector<1x128xf32>
    %cst_22 = arith.constant 1.000000e+00 : f32
    %54 = vector.broadcast %cst_22 : f32 to vector<1x128xf32>
    %55 = arith.addf %54, %53 : vector<1x128xf32>
    %56 = arith.divf %54, %55 : vector<1x128xf32>
    %57 = vector.extract_strided_slice %56 {offsets = [0, 0], sizes = [1, 32], strides = [1, 1]} : vector<1x128xf32> to vector<1x32xf32>
    %58 = vector.extract_strided_slice %56 {offsets = [0, 32], sizes = [1, 32], strides = [1, 1]} : vector<1x128xf32> to vector<1x32xf32>
    %59 = vector.extract_strided_slice %56 {offsets = [0, 96], sizes = [1, 32], strides = [1, 1]} : vector<1x128xf32> to vector<1x32xf32>
    %60 = vector.extract_strided_slice %51 {offsets = [0, 64], sizes = [1, 32], strides = [1, 1]} : vector<1x128xf32> to vector<1x32xf32>
    %61 = math.tanh %60 : vector<1x32xf32>
    %62 = arith.mulf %57, %46 : vector<1x32xf32>
    %63 = arith.mulf %58, %61 : vector<1x32xf32>
    %64 = arith.addf %62, %63 : vector<1x32xf32>
    %65 = math.tanh %64 : vector<1x32xf32>
    %66 = arith.mulf %59, %65 : vector<1x32xf32>
    %67 = vector.extract_strided_slice %9 {offsets = [3, 0], sizes = [1, 128], strides = [1, 1]} : vector<16x128xf32> to vector<1x128xf32>
    %cst_23 = arith.constant dense<0.000000e+00> : vector<1x128xf32>
    %68 = tpu.matmul %66, %10, %cst_23 {dimension_numbers = #tpu.dot_dimension_numbers<[1], [0], [0], [1], [0, 0, 1, 1], [], []>} : vector<1x32xf32>, vector<32x128xf32>, vector<1x128xf32> -> vector<1x128xf32>
    %69 = arith.addf %67, %68 : vector<1x128xf32>
    %70 = arith.negf %69 : vector<1x128xf32>
    %71 = math.exp %70 : vector<1x128xf32>
    %cst_24 = arith.constant 1.000000e+00 : f32
    %72 = vector.broadcast %cst_24 : f32 to vector<1x128xf32>
    %73 = arith.addf %72, %71 : vector<1x128xf32>
    %74 = arith.divf %72, %73 : vector<1x128xf32>
    %75 = vector.extract_strided_slice %74 {offsets = [0, 0], sizes = [1, 32], strides = [1, 1]} : vector<1x128xf32> to vector<1x32xf32>
    %76 = vector.extract_strided_slice %74 {offsets = [0, 32], sizes = [1, 32], strides = [1, 1]} : vector<1x128xf32> to vector<1x32xf32>
    %77 = vector.extract_strided_slice %74 {offsets = [0, 96], sizes = [1, 32], strides = [1, 1]} : vector<1x128xf32> to vector<1x32xf32>
    %78 = vector.extract_strided_slice %69 {offsets = [0, 64], sizes = [1, 32], strides = [1, 1]} : vector<1x128xf32> to vector<1x32xf32>
    %79 = math.tanh %78 : vector<1x32xf32>
    %80 = arith.mulf %75, %64 : vector<1x32xf32>
    %81 = arith.mulf %76, %79 : vector<1x32xf32>
    %82 = arith.addf %80, %81 : vector<1x32xf32>
    %83 = math.tanh %82 : vector<1x32xf32>
    %84 = arith.mulf %77, %83 : vector<1x32xf32>
    %85 = vector.extract_strided_slice %9 {offsets = [4, 0], sizes = [1, 128], strides = [1, 1]} : vector<16x128xf32> to vector<1x128xf32>
    %cst_25 = arith.constant dense<0.000000e+00> : vector<1x128xf32>
    %86 = tpu.matmul %84, %10, %cst_25 {dimension_numbers = #tpu.dot_dimension_numbers<[1], [0], [0], [1], [0, 0, 1, 1], [], []>} : vector<1x32xf32>, vector<32x128xf32>, vector<1x128xf32> -> vector<1x128xf32>
    %87 = arith.addf %85, %86 : vector<1x128xf32>
    %88 = arith.negf %87 : vector<1x128xf32>
    %89 = math.exp %88 : vector<1x128xf32>
    %cst_26 = arith.constant 1.000000e+00 : f32
    %90 = vector.broadcast %cst_26 : f32 to vector<1x128xf32>
    %91 = arith.addf %90, %89 : vector<1x128xf32>
    %92 = arith.divf %90, %91 : vector<1x128xf32>
    %93 = vector.extract_strided_slice %92 {offsets = [0, 0], sizes = [1, 32], strides = [1, 1]} : vector<1x128xf32> to vector<1x32xf32>
    %94 = vector.extract_strided_slice %92 {offsets = [0, 32], sizes = [1, 32], strides = [1, 1]} : vector<1x128xf32> to vector<1x32xf32>
    %95 = vector.extract_strided_slice %92 {offsets = [0, 96], sizes = [1, 32], strides = [1, 1]} : vector<1x128xf32> to vector<1x32xf32>
    %96 = vector.extract_strided_slice %87 {offsets = [0, 64], sizes = [1, 32], strides = [1, 1]} : vector<1x128xf32> to vector<1x32xf32>
    %97 = math.tanh %96 : vector<1x32xf32>
    %98 = arith.mulf %93, %82 : vector<1x32xf32>
    %99 = arith.mulf %94, %97 : vector<1x32xf32>
    %100 = arith.addf %98, %99 : vector<1x32xf32>
    %101 = math.tanh %100 : vector<1x32xf32>
    %102 = arith.mulf %95, %101 : vector<1x32xf32>
    %103 = vector.extract_strided_slice %9 {offsets = [5, 0], sizes = [1, 128], strides = [1, 1]} : vector<16x128xf32> to vector<1x128xf32>
    %cst_27 = arith.constant dense<0.000000e+00> : vector<1x128xf32>
    %104 = tpu.matmul %102, %10, %cst_27 {dimension_numbers = #tpu.dot_dimension_numbers<[1], [0], [0], [1], [0, 0, 1, 1], [], []>} : vector<1x32xf32>, vector<32x128xf32>, vector<1x128xf32> -> vector<1x128xf32>
    %105 = arith.addf %103, %104 : vector<1x128xf32>
    %106 = arith.negf %105 : vector<1x128xf32>
    %107 = math.exp %106 : vector<1x128xf32>
    %cst_28 = arith.constant 1.000000e+00 : f32
    %108 = vector.broadcast %cst_28 : f32 to vector<1x128xf32>
    %109 = arith.addf %108, %107 : vector<1x128xf32>
    %110 = arith.divf %108, %109 : vector<1x128xf32>
    %111 = vector.extract_strided_slice %110 {offsets = [0, 0], sizes = [1, 32], strides = [1, 1]} : vector<1x128xf32> to vector<1x32xf32>
    %112 = vector.extract_strided_slice %110 {offsets = [0, 32], sizes = [1, 32], strides = [1, 1]} : vector<1x128xf32> to vector<1x32xf32>
    %113 = vector.extract_strided_slice %110 {offsets = [0, 96], sizes = [1, 32], strides = [1, 1]} : vector<1x128xf32> to vector<1x32xf32>
    %114 = vector.extract_strided_slice %105 {offsets = [0, 64], sizes = [1, 32], strides = [1, 1]} : vector<1x128xf32> to vector<1x32xf32>
    %115 = math.tanh %114 : vector<1x32xf32>
    %116 = arith.mulf %111, %100 : vector<1x32xf32>
    %117 = arith.mulf %112, %115 : vector<1x32xf32>
    %118 = arith.addf %116, %117 : vector<1x32xf32>
    %119 = math.tanh %118 : vector<1x32xf32>
    %120 = arith.mulf %113, %119 : vector<1x32xf32>
    %121 = vector.extract_strided_slice %9 {offsets = [6, 0], sizes = [1, 128], strides = [1, 1]} : vector<16x128xf32> to vector<1x128xf32>
    %cst_29 = arith.constant dense<0.000000e+00> : vector<1x128xf32>
    %122 = tpu.matmul %120, %10, %cst_29 {dimension_numbers = #tpu.dot_dimension_numbers<[1], [0], [0], [1], [0, 0, 1, 1], [], []>} : vector<1x32xf32>, vector<32x128xf32>, vector<1x128xf32> -> vector<1x128xf32>
    %123 = arith.addf %121, %122 : vector<1x128xf32>
    %124 = arith.negf %123 : vector<1x128xf32>
    %125 = math.exp %124 : vector<1x128xf32>
    %cst_30 = arith.constant 1.000000e+00 : f32
    %126 = vector.broadcast %cst_30 : f32 to vector<1x128xf32>
    %127 = arith.addf %126, %125 : vector<1x128xf32>
    %128 = arith.divf %126, %127 : vector<1x128xf32>
    %129 = vector.extract_strided_slice %128 {offsets = [0, 0], sizes = [1, 32], strides = [1, 1]} : vector<1x128xf32> to vector<1x32xf32>
    %130 = vector.extract_strided_slice %128 {offsets = [0, 32], sizes = [1, 32], strides = [1, 1]} : vector<1x128xf32> to vector<1x32xf32>
    %131 = vector.extract_strided_slice %128 {offsets = [0, 96], sizes = [1, 32], strides = [1, 1]} : vector<1x128xf32> to vector<1x32xf32>
    %132 = vector.extract_strided_slice %123 {offsets = [0, 64], sizes = [1, 32], strides = [1, 1]} : vector<1x128xf32> to vector<1x32xf32>
    %133 = math.tanh %132 : vector<1x32xf32>
    %134 = arith.mulf %129, %118 : vector<1x32xf32>
    %135 = arith.mulf %130, %133 : vector<1x32xf32>
    %136 = arith.addf %134, %135 : vector<1x32xf32>
    %137 = math.tanh %136 : vector<1x32xf32>
    %138 = arith.mulf %131, %137 : vector<1x32xf32>
    %139 = vector.extract_strided_slice %9 {offsets = [7, 0], sizes = [1, 128], strides = [1, 1]} : vector<16x128xf32> to vector<1x128xf32>
    %cst_31 = arith.constant dense<0.000000e+00> : vector<1x128xf32>
    %140 = tpu.matmul %138, %10, %cst_31 {dimension_numbers = #tpu.dot_dimension_numbers<[1], [0], [0], [1], [0, 0, 1, 1], [], []>} : vector<1x32xf32>, vector<32x128xf32>, vector<1x128xf32> -> vector<1x128xf32>
    %141 = arith.addf %139, %140 : vector<1x128xf32>
    %142 = arith.negf %141 : vector<1x128xf32>
    %143 = math.exp %142 : vector<1x128xf32>
    %cst_32 = arith.constant 1.000000e+00 : f32
    %144 = vector.broadcast %cst_32 : f32 to vector<1x128xf32>
    %145 = arith.addf %144, %143 : vector<1x128xf32>
    %146 = arith.divf %144, %145 : vector<1x128xf32>
    %147 = vector.extract_strided_slice %146 {offsets = [0, 0], sizes = [1, 32], strides = [1, 1]} : vector<1x128xf32> to vector<1x32xf32>
    %148 = vector.extract_strided_slice %146 {offsets = [0, 32], sizes = [1, 32], strides = [1, 1]} : vector<1x128xf32> to vector<1x32xf32>
    %149 = vector.extract_strided_slice %146 {offsets = [0, 96], sizes = [1, 32], strides = [1, 1]} : vector<1x128xf32> to vector<1x32xf32>
    %150 = vector.extract_strided_slice %141 {offsets = [0, 64], sizes = [1, 32], strides = [1, 1]} : vector<1x128xf32> to vector<1x32xf32>
    %151 = math.tanh %150 : vector<1x32xf32>
    %152 = arith.mulf %147, %136 : vector<1x32xf32>
    %153 = arith.mulf %148, %151 : vector<1x32xf32>
    %154 = arith.addf %152, %153 : vector<1x32xf32>
    %155 = math.tanh %154 : vector<1x32xf32>
    %156 = arith.mulf %149, %155 : vector<1x32xf32>
    %157 = vector.extract_strided_slice %9 {offsets = [8, 0], sizes = [1, 128], strides = [1, 1]} : vector<16x128xf32> to vector<1x128xf32>
    %cst_33 = arith.constant dense<0.000000e+00> : vector<1x128xf32>
    %158 = tpu.matmul %156, %10, %cst_33 {dimension_numbers = #tpu.dot_dimension_numbers<[1], [0], [0], [1], [0, 0, 1, 1], [], []>} : vector<1x32xf32>, vector<32x128xf32>, vector<1x128xf32> -> vector<1x128xf32>
    %159 = arith.addf %157, %158 : vector<1x128xf32>
    %160 = arith.negf %159 : vector<1x128xf32>
    %161 = math.exp %160 : vector<1x128xf32>
    %cst_34 = arith.constant 1.000000e+00 : f32
    %162 = vector.broadcast %cst_34 : f32 to vector<1x128xf32>
    %163 = arith.addf %162, %161 : vector<1x128xf32>
    %164 = arith.divf %162, %163 : vector<1x128xf32>
    %165 = vector.extract_strided_slice %164 {offsets = [0, 0], sizes = [1, 32], strides = [1, 1]} : vector<1x128xf32> to vector<1x32xf32>
    %166 = vector.extract_strided_slice %164 {offsets = [0, 32], sizes = [1, 32], strides = [1, 1]} : vector<1x128xf32> to vector<1x32xf32>
    %167 = vector.extract_strided_slice %164 {offsets = [0, 96], sizes = [1, 32], strides = [1, 1]} : vector<1x128xf32> to vector<1x32xf32>
    %168 = vector.extract_strided_slice %159 {offsets = [0, 64], sizes = [1, 32], strides = [1, 1]} : vector<1x128xf32> to vector<1x32xf32>
    %169 = math.tanh %168 : vector<1x32xf32>
    %170 = arith.mulf %165, %154 : vector<1x32xf32>
    %171 = arith.mulf %166, %169 : vector<1x32xf32>
    %172 = arith.addf %170, %171 : vector<1x32xf32>
    %173 = math.tanh %172 : vector<1x32xf32>
    %174 = arith.mulf %167, %173 : vector<1x32xf32>
    %175 = vector.extract_strided_slice %9 {offsets = [9, 0], sizes = [1, 128], strides = [1, 1]} : vector<16x128xf32> to vector<1x128xf32>
    %cst_35 = arith.constant dense<0.000000e+00> : vector<1x128xf32>
    %176 = tpu.matmul %174, %10, %cst_35 {dimension_numbers = #tpu.dot_dimension_numbers<[1], [0], [0], [1], [0, 0, 1, 1], [], []>} : vector<1x32xf32>, vector<32x128xf32>, vector<1x128xf32> -> vector<1x128xf32>
    %177 = arith.addf %175, %176 : vector<1x128xf32>
    %178 = arith.negf %177 : vector<1x128xf32>
    %179 = math.exp %178 : vector<1x128xf32>
    %cst_36 = arith.constant 1.000000e+00 : f32
    %180 = vector.broadcast %cst_36 : f32 to vector<1x128xf32>
    %181 = arith.addf %180, %179 : vector<1x128xf32>
    %182 = arith.divf %180, %181 : vector<1x128xf32>
    %183 = vector.extract_strided_slice %182 {offsets = [0, 0], sizes = [1, 32], strides = [1, 1]} : vector<1x128xf32> to vector<1x32xf32>
    %184 = vector.extract_strided_slice %182 {offsets = [0, 32], sizes = [1, 32], strides = [1, 1]} : vector<1x128xf32> to vector<1x32xf32>
    %185 = vector.extract_strided_slice %182 {offsets = [0, 96], sizes = [1, 32], strides = [1, 1]} : vector<1x128xf32> to vector<1x32xf32>
    %186 = vector.extract_strided_slice %177 {offsets = [0, 64], sizes = [1, 32], strides = [1, 1]} : vector<1x128xf32> to vector<1x32xf32>
    %187 = math.tanh %186 : vector<1x32xf32>
    %188 = arith.mulf %183, %172 : vector<1x32xf32>
    %189 = arith.mulf %184, %187 : vector<1x32xf32>
    %190 = arith.addf %188, %189 : vector<1x32xf32>
    %191 = math.tanh %190 : vector<1x32xf32>
    %192 = arith.mulf %185, %191 : vector<1x32xf32>
    %193 = vector.extract_strided_slice %9 {offsets = [10, 0], sizes = [1, 128], strides = [1, 1]} : vector<16x128xf32> to vector<1x128xf32>
    %cst_37 = arith.constant dense<0.000000e+00> : vector<1x128xf32>
    %194 = tpu.matmul %192, %10, %cst_37 {dimension_numbers = #tpu.dot_dimension_numbers<[1], [0], [0], [1], [0, 0, 1, 1], [], []>} : vector<1x32xf32>, vector<32x128xf32>, vector<1x128xf32> -> vector<1x128xf32>
    %195 = arith.addf %193, %194 : vector<1x128xf32>
    %196 = arith.negf %195 : vector<1x128xf32>
    %197 = math.exp %196 : vector<1x128xf32>
    %cst_38 = arith.constant 1.000000e+00 : f32
    %198 = vector.broadcast %cst_38 : f32 to vector<1x128xf32>
    %199 = arith.addf %198, %197 : vector<1x128xf32>
    %200 = arith.divf %198, %199 : vector<1x128xf32>
    %201 = vector.extract_strided_slice %200 {offsets = [0, 0], sizes = [1, 32], strides = [1, 1]} : vector<1x128xf32> to vector<1x32xf32>
    %202 = vector.extract_strided_slice %200 {offsets = [0, 32], sizes = [1, 32], strides = [1, 1]} : vector<1x128xf32> to vector<1x32xf32>
    %203 = vector.extract_strided_slice %200 {offsets = [0, 96], sizes = [1, 32], strides = [1, 1]} : vector<1x128xf32> to vector<1x32xf32>
    %204 = vector.extract_strided_slice %195 {offsets = [0, 64], sizes = [1, 32], strides = [1, 1]} : vector<1x128xf32> to vector<1x32xf32>
    %205 = math.tanh %204 : vector<1x32xf32>
    %206 = arith.mulf %201, %190 : vector<1x32xf32>
    %207 = arith.mulf %202, %205 : vector<1x32xf32>
    %208 = arith.addf %206, %207 : vector<1x32xf32>
    %209 = math.tanh %208 : vector<1x32xf32>
    %210 = arith.mulf %203, %209 : vector<1x32xf32>
    %211 = vector.extract_strided_slice %9 {offsets = [11, 0], sizes = [1, 128], strides = [1, 1]} : vector<16x128xf32> to vector<1x128xf32>
    %cst_39 = arith.constant dense<0.000000e+00> : vector<1x128xf32>
    %212 = tpu.matmul %210, %10, %cst_39 {dimension_numbers = #tpu.dot_dimension_numbers<[1], [0], [0], [1], [0, 0, 1, 1], [], []>} : vector<1x32xf32>, vector<32x128xf32>, vector<1x128xf32> -> vector<1x128xf32>
    %213 = arith.addf %211, %212 : vector<1x128xf32>
    %214 = arith.negf %213 : vector<1x128xf32>
    %215 = math.exp %214 : vector<1x128xf32>
    %cst_40 = arith.constant 1.000000e+00 : f32
    %216 = vector.broadcast %cst_40 : f32 to vector<1x128xf32>
    %217 = arith.addf %216, %215 : vector<1x128xf32>
    %218 = arith.divf %216, %217 : vector<1x128xf32>
    %219 = vector.extract_strided_slice %218 {offsets = [0, 0], sizes = [1, 32], strides = [1, 1]} : vector<1x128xf32> to vector<1x32xf32>
    %220 = vector.extract_strided_slice %218 {offsets = [0, 32], sizes = [1, 32], strides = [1, 1]} : vector<1x128xf32> to vector<1x32xf32>
    %221 = vector.extract_strided_slice %218 {offsets = [0, 96], sizes = [1, 32], strides = [1, 1]} : vector<1x128xf32> to vector<1x32xf32>
    %222 = vector.extract_strided_slice %213 {offsets = [0, 64], sizes = [1, 32], strides = [1, 1]} : vector<1x128xf32> to vector<1x32xf32>
    %223 = math.tanh %222 : vector<1x32xf32>
    %224 = arith.mulf %219, %208 : vector<1x32xf32>
    %225 = arith.mulf %220, %223 : vector<1x32xf32>
    %226 = arith.addf %224, %225 : vector<1x32xf32>
    %227 = math.tanh %226 : vector<1x32xf32>
    %228 = arith.mulf %221, %227 : vector<1x32xf32>
    %229 = vector.extract_strided_slice %9 {offsets = [12, 0], sizes = [1, 128], strides = [1, 1]} : vector<16x128xf32> to vector<1x128xf32>
    %cst_41 = arith.constant dense<0.000000e+00> : vector<1x128xf32>
    %230 = tpu.matmul %228, %10, %cst_41 {dimension_numbers = #tpu.dot_dimension_numbers<[1], [0], [0], [1], [0, 0, 1, 1], [], []>} : vector<1x32xf32>, vector<32x128xf32>, vector<1x128xf32> -> vector<1x128xf32>
    %231 = arith.addf %229, %230 : vector<1x128xf32>
    %232 = arith.negf %231 : vector<1x128xf32>
    %233 = math.exp %232 : vector<1x128xf32>
    %cst_42 = arith.constant 1.000000e+00 : f32
    %234 = vector.broadcast %cst_42 : f32 to vector<1x128xf32>
    %235 = arith.addf %234, %233 : vector<1x128xf32>
    %236 = arith.divf %234, %235 : vector<1x128xf32>
    %237 = vector.extract_strided_slice %236 {offsets = [0, 0], sizes = [1, 32], strides = [1, 1]} : vector<1x128xf32> to vector<1x32xf32>
    %238 = vector.extract_strided_slice %236 {offsets = [0, 32], sizes = [1, 32], strides = [1, 1]} : vector<1x128xf32> to vector<1x32xf32>
    %239 = vector.extract_strided_slice %236 {offsets = [0, 96], sizes = [1, 32], strides = [1, 1]} : vector<1x128xf32> to vector<1x32xf32>
    %240 = vector.extract_strided_slice %231 {offsets = [0, 64], sizes = [1, 32], strides = [1, 1]} : vector<1x128xf32> to vector<1x32xf32>
    %241 = math.tanh %240 : vector<1x32xf32>
    %242 = arith.mulf %237, %226 : vector<1x32xf32>
    %243 = arith.mulf %238, %241 : vector<1x32xf32>
    %244 = arith.addf %242, %243 : vector<1x32xf32>
    %245 = math.tanh %244 : vector<1x32xf32>
    %246 = arith.mulf %239, %245 : vector<1x32xf32>
    %247 = vector.extract_strided_slice %9 {offsets = [13, 0], sizes = [1, 128], strides = [1, 1]} : vector<16x128xf32> to vector<1x128xf32>
    %cst_43 = arith.constant dense<0.000000e+00> : vector<1x128xf32>
    %248 = tpu.matmul %246, %10, %cst_43 {dimension_numbers = #tpu.dot_dimension_numbers<[1], [0], [0], [1], [0, 0, 1, 1], [], []>} : vector<1x32xf32>, vector<32x128xf32>, vector<1x128xf32> -> vector<1x128xf32>
    %249 = arith.addf %247, %248 : vector<1x128xf32>
    %250 = arith.negf %249 : vector<1x128xf32>
    %251 = math.exp %250 : vector<1x128xf32>
    %cst_44 = arith.constant 1.000000e+00 : f32
    %252 = vector.broadcast %cst_44 : f32 to vector<1x128xf32>
    %253 = arith.addf %252, %251 : vector<1x128xf32>
    %254 = arith.divf %252, %253 : vector<1x128xf32>
    %255 = vector.extract_strided_slice %254 {offsets = [0, 0], sizes = [1, 32], strides = [1, 1]} : vector<1x128xf32> to vector<1x32xf32>
    %256 = vector.extract_strided_slice %254 {offsets = [0, 32], sizes = [1, 32], strides = [1, 1]} : vector<1x128xf32> to vector<1x32xf32>
    %257 = vector.extract_strided_slice %254 {offsets = [0, 96], sizes = [1, 32], strides = [1, 1]} : vector<1x128xf32> to vector<1x32xf32>
    %258 = vector.extract_strided_slice %249 {offsets = [0, 64], sizes = [1, 32], strides = [1, 1]} : vector<1x128xf32> to vector<1x32xf32>
    %259 = math.tanh %258 : vector<1x32xf32>
    %260 = arith.mulf %255, %244 : vector<1x32xf32>
    %261 = arith.mulf %256, %259 : vector<1x32xf32>
    %262 = arith.addf %260, %261 : vector<1x32xf32>
    %263 = math.tanh %262 : vector<1x32xf32>
    %264 = arith.mulf %257, %263 : vector<1x32xf32>
    %265 = vector.extract_strided_slice %9 {offsets = [14, 0], sizes = [1, 128], strides = [1, 1]} : vector<16x128xf32> to vector<1x128xf32>
    %cst_45 = arith.constant dense<0.000000e+00> : vector<1x128xf32>
    %266 = tpu.matmul %264, %10, %cst_45 {dimension_numbers = #tpu.dot_dimension_numbers<[1], [0], [0], [1], [0, 0, 1, 1], [], []>} : vector<1x32xf32>, vector<32x128xf32>, vector<1x128xf32> -> vector<1x128xf32>
    %267 = arith.addf %265, %266 : vector<1x128xf32>
    %268 = arith.negf %267 : vector<1x128xf32>
    %269 = math.exp %268 : vector<1x128xf32>
    %cst_46 = arith.constant 1.000000e+00 : f32
    %270 = vector.broadcast %cst_46 : f32 to vector<1x128xf32>
    %271 = arith.addf %270, %269 : vector<1x128xf32>
    %272 = arith.divf %270, %271 : vector<1x128xf32>
    %273 = vector.extract_strided_slice %272 {offsets = [0, 0], sizes = [1, 32], strides = [1, 1]} : vector<1x128xf32> to vector<1x32xf32>
    %274 = vector.extract_strided_slice %272 {offsets = [0, 32], sizes = [1, 32], strides = [1, 1]} : vector<1x128xf32> to vector<1x32xf32>
    %275 = vector.extract_strided_slice %272 {offsets = [0, 96], sizes = [1, 32], strides = [1, 1]} : vector<1x128xf32> to vector<1x32xf32>
    %276 = vector.extract_strided_slice %267 {offsets = [0, 64], sizes = [1, 32], strides = [1, 1]} : vector<1x128xf32> to vector<1x32xf32>
    %277 = math.tanh %276 : vector<1x32xf32>
    %278 = arith.mulf %273, %262 : vector<1x32xf32>
    %279 = arith.mulf %274, %277 : vector<1x32xf32>
    %280 = arith.addf %278, %279 : vector<1x32xf32>
    %281 = math.tanh %280 : vector<1x32xf32>
    %282 = arith.mulf %275, %281 : vector<1x32xf32>
    %283 = vector.extract_strided_slice %9 {offsets = [15, 0], sizes = [1, 128], strides = [1, 1]} : vector<16x128xf32> to vector<1x128xf32>
    %cst_47 = arith.constant dense<0.000000e+00> : vector<1x128xf32>
    %284 = tpu.matmul %282, %10, %cst_47 {dimension_numbers = #tpu.dot_dimension_numbers<[1], [0], [0], [1], [0, 0, 1, 1], [], []>} : vector<1x32xf32>, vector<32x128xf32>, vector<1x128xf32> -> vector<1x128xf32>
    %285 = arith.addf %283, %284 : vector<1x128xf32>
    %286 = arith.negf %285 : vector<1x128xf32>
    %287 = math.exp %286 : vector<1x128xf32>
    %cst_48 = arith.constant 1.000000e+00 : f32
    %288 = vector.broadcast %cst_48 : f32 to vector<1x128xf32>
    %289 = arith.addf %288, %287 : vector<1x128xf32>
    %290 = arith.divf %288, %289 : vector<1x128xf32>
    %291 = vector.extract_strided_slice %290 {offsets = [0, 0], sizes = [1, 32], strides = [1, 1]} : vector<1x128xf32> to vector<1x32xf32>
    %292 = vector.extract_strided_slice %290 {offsets = [0, 32], sizes = [1, 32], strides = [1, 1]} : vector<1x128xf32> to vector<1x32xf32>
    %293 = vector.extract_strided_slice %290 {offsets = [0, 96], sizes = [1, 32], strides = [1, 1]} : vector<1x128xf32> to vector<1x32xf32>
    %294 = vector.extract_strided_slice %285 {offsets = [0, 64], sizes = [1, 32], strides = [1, 1]} : vector<1x128xf32> to vector<1x32xf32>
    %295 = math.tanh %294 : vector<1x32xf32>
    %296 = arith.mulf %291, %280 : vector<1x32xf32>
    %297 = arith.mulf %292, %295 : vector<1x32xf32>
    %298 = arith.addf %296, %297 : vector<1x32xf32>
    %299 = math.tanh %298 : vector<1x32xf32>
    %300 = arith.mulf %293, %299 : vector<1x32xf32>
    %c0_49 = arith.constant 0 : index
    %c0_50 = arith.constant 0 : index
    %301 = vector.load %arg7[%c0_49, %c0_50] : memref<1x64xf32, #tpu.memory_space<vmem>>, vector<1x32xf32>
    tpu.vector_store %arg7[%c0_49, %c0_50], %300 {strides = array<i32>} : memref<1x64xf32, #tpu.memory_space<vmem>>, vector<1x32xf32>,
    %c0_51 = arith.constant 0 : index
    %c32_52 = arith.constant 32 : index
    %302 = vector.load %arg7[%c0_51, %c32_52] : memref<1x64xf32, #tpu.memory_space<vmem>>, vector<1x32xf32>
    tpu.vector_store %arg7[%c0_51, %c32_52], %298 {strides = array<i32>} : memref<1x64xf32, #tpu.memory_space<vmem>>, vector<1x32xf32>,
    return
  }
  func.func @transform_0(%arg0: i32) -> (i32, i32) {
    %c0_i32 = arith.constant 0 : i32
    %c0_i32_0 = arith.constant 0 : i32
    %c0_i32_1 = arith.constant 0 : i32
    return %c0_i32, %c0_i32_0 : i32, i32
  }
  func.func @transform_1(%arg0: i32) -> (i32, i32) {
    %c0_i32 = arith.constant 0 : i32
    %c0_i32_0 = arith.constant 0 : i32
    %c0_i32_1 = arith.constant 0 : i32
    return %c0_i32, %c0_i32_0 : i32, i32
  }
  func.func @transform_2(%arg0: i32) -> (i32, i32) {
    %c0_i32 = arith.constant 0 : i32
    %c0_i32_0 = arith.constant 0 : i32
    %c0_i32_1 = arith.constant 0 : i32
    return %c0_i32, %c0_i32_0 : i32, i32
  }
  func.func @transform_3(%arg0: i32) -> (i32, i32) {
    %c0_i32 = arith.constant 0 : i32
    %c0_i32_0 = arith.constant 0 : i32
    %c0_i32_1 = arith.constant 0 : i32
    return %c0_i32, %c0_i32_0 : i32, i32
  }
  func.func @transform_4(%arg0: i32) -> (i32, i32) {
    %c0_i32 = arith.constant 0 : i32
    %c0_i32_0 = arith.constant 0 : i32
    %c0_i32_1 = arith.constant 0 : i32
    return %c0_i32, %c0_i32_0 : i32, i32
  }
  func.func @transform_5(%arg0: i32) -> (i32, i32) {
    %c0_i32 = arith.constant 0 : i32
    %c0_i32_0 = arith.constant 0 : i32
    %c0_i32_1 = arith.constant 0 : i32
    return %c0_i32, %c0_i32_0 : i32, i32
  }
  func.func @transform_6(%arg0: i32) -> (i32, i32) {
    %c0_i32 = arith.constant 0 : i32
    %c0_i32_0 = arith.constant 0 : i32
    %c0_i32_1 = arith.constant 0 : i32
    return %c0_i32, %c0_i32_0 : i32, i32
  }
}

</mosaic_0001>

<bundles_post_ra>
// kernel: _lstm_forward.1
= control target key start
LH: loop header
LB: loop body
LE: loop exit
PB: predicated region body
PF: predicated region fallthrough
CT: control target
= control target key end

     0   :  { %11 = vsyncpa [#allocation4], 0  ;;  %s2859_s0 = inlined_call_operand.hbm [shape: f32[8,32], index: 0, kind: input, shape index: {}]   ;;  %s2860_s1 = inlined_call_operand.hbm [shape: f32[8,32], index: 1, kind: input, shape index: {}]   ;;  %s2861_s2 = inlined_call_operand.hbm [shape: f32[32,128], index: 2, kind: input, shape index: {}]   ;;  %s2862_s3 = inlined_call_operand.hbm [shape: f32[32,128], index: 3, kind: input, shape index: {}]   ;;  %s2863_s4 = inlined_call_operand.vmem [shape: f32[1,128], index: 4, kind: input, shape index: {}]   ;;  %s2864_s5 = inlined_call_operand.vmem [shape: f32[1,64], index: 5, kind: input, shape index: {}, may-alias: {5,6}]   ;;  %s2865_s6 = inlined_call_operand.vmem [shape: f32[1,64], index: 6, kind: output, shape index: {}, may-alias: {5,6}]  }
   0x1   :  { %12 = vsyncpa [#allocation6], 0 }
   0x2   :  { %13 = vsyncpa [#allocation9], 0  ;;  %s2547_s21 = smov [#allocation5]   ;;  %s2548_s23 = smov [#allocation3]  }
   0x3   :  { %s30_s22 = sshll.u32 %s2547_s21, 4  ;;  %s20_s24 = sshll.u32 %s2548_s23, 4  ;;  %s31_s22 = int_to_ptr.vmem [resolvable:$true] %s30_s22  ;;  %s21_s24 = int_to_ptr.vmem [resolvable:$true] %s20_s24 }
   0x4   :  { %s2453_s27 = scalar_lea.hbm %s2860_s1, 128 }
   0x5   :  { %p2454_p0 = scmp.ne.s32.totalorder %s2860_s1, %s2453_s27  ;;  %p2457_p1 = scmp.lt.u32.totalorder %s2453_s27, %s2860_s1 }
   0x7   :  { %p2459_p2 = pnand %p2457_p1, %p2454_p0 }
   0x9   :  { %2462 = shalt.err (!%p2459_p2)
}
   0xa   :  { %s2463_s8 = scalar_lea.vmem %s31_s22, 128  ;;  %p2468_p4 = scmp.lt.s32.totalorder %s31_s22, %s31_s22 }
   0xb   :  { %p2464_p3 = scmp.ne.s32.totalorder %s31_s22, %s2463_s8  ;;  %p2469_p5 = scmp.lt.s32.totalorder %s2463_s8, %s2463_s8 }
   0xd   :  { %p2470_p6 = por %p2469_p5, %p2468_p4 }
   0xf   :  { %p2471_p7 = pnand %p2470_p6, %p2464_p3 }
  0x11   :  { %2474 = shalt.err (!%p2471_p7)
}
  0x12   :  { %33 = dma.hbm_to_vmem [thread:$0]  %s2860_s1, 128, %s31_s22, [#allocation6]  }
  0x13   :  { %s2475_s13 = scalar_lea.hbm %s2859_s0, 128 }
  0x14   :  { %p2476_p8 = scmp.ne.s32.totalorder %s2859_s0, %s2475_s13  ;;  %p2479_p9 = scmp.lt.u32.totalorder %s2475_s13, %s2859_s0 }
  0x16   :  { %p2481_p10 = pnand %p2479_p9, %p2476_p8 }
  0x18   :  { %2484 = shalt.err (!%p2481_p10)
}
  0x19   :  { %s2485_s18 = scalar_lea.vmem %s21_s24, 128  ;;  %p2490_p12 = scmp.lt.s32.totalorder %s21_s24, %s21_s24 }
  0x1a   :  { %p2486_p11 = scmp.ne.s32.totalorder %s21_s24, %s2485_s18  ;;  %p2491_p13 = scmp.lt.s32.totalorder %s2485_s18, %s2485_s18 }
  0x1c   :  { %p2492_p0 = por %p2491_p13, %p2490_p12 }
  0x1e   :  { %p2493_p1 = pnand %p2492_p0, %p2486_p11 }
  0x20   :  { %2496 = shalt.err (!%p2493_p1)
}
  0x21   :  { %23 = dma.hbm_to_vmem [thread:$0]  %s2859_s0, 128, %s21_s24, [#allocation4]  }
  0x22   :  { %s2549_s20 = smov [#allocation7]   ;;  %s2497_s25 = scalar_lea.hbm %s2861_s2, 512 }
  0x23   :  { %s39_s21 = sshll.u32 %s2549_s20, 4  ;;  %p2498_p2 = scmp.ne.s32.totalorder %s2861_s2, %s2497_s25  ;;  %s40_s21 = int_to_ptr.vmem [resolvable:$true] %s39_s21 }
  0x24   :  { %p2501_p3 = scmp.lt.u32.totalorder %s2497_s25, %s2861_s2 }
  0x26   :  { %p2503_p4 = pnand %p2501_p3, %p2498_p2 }
  0x28   :  { %2506 = shalt.err (!%p2503_p4)
}
  0x29   :  { %s2507_s30 = scalar_lea.vmem %s40_s21, 512  ;;  %p2512_p6 = scmp.lt.s32.totalorder %s40_s21, %s40_s21 }
  0x2a   :  { %p2508_p5 = scmp.ne.s32.totalorder %s40_s21, %s2507_s30  ;;  %p2513_p7 = scmp.lt.s32.totalorder %s2507_s30, %s2507_s30 }
  0x2c   :  { %p2514_p8 = por %p2513_p7, %p2512_p6 }
  0x2e   :  { %p2515_p9 = pnand %p2514_p8, %p2508_p5 }
  0x30   :  { %2518 = shalt.err (!%p2515_p9)
}
  0x31   :  { %s2550_s0 = smov 128   ;;  %s2551_s24 = smov 8  }
  0x32   :  { %45 = dma.hbm_to_vmem [thread:$0]  %s2861_s2, 512, %s40_s21, [#allocation6], %s2550_s0, %s2550_s0, %s2551_s24  }
  0x33   :  { %s2552_s9 = smov [#allocation8]   ;;  %s2519_s13 = scalar_lea.hbm %s2862_s3, 512 }
  0x34   :  { %s51_s10 = sshll.u32 %s2552_s9, 4  ;;  %p2520_p10 = scmp.ne.s32.totalorder %s2862_s3, %s2519_s13  ;;  %s52_s10 = int_to_ptr.vmem [resolvable:$true] %s51_s10 }
  0x35   :  { %p2523_p11 = scmp.lt.u32.totalorder %s2519_s13, %s2862_s3 }
  0x37   :  { %p2525_p12 = pnand %p2523_p11, %p2520_p10 }
  0x39   :  { %2528 = shalt.err (!%p2525_p12)
}
  0x3a   :  { %s2529_s18 = scalar_lea.vmem %s52_s10, 512  ;;  %p2534_p0 = scmp.lt.s32.totalorder %s52_s10, %s52_s10 }
  0x3b   :  { %p2530_p13 = scmp.ne.s32.totalorder %s52_s10, %s2529_s18  ;;  %p2535_p1 = scmp.lt.s32.totalorder %s2529_s18, %s2529_s18 }
  0x3d   :  { %p2536_p2 = por %p2535_p1, %p2534_p0 }
  0x3f   :  { %p2537_p3 = pnand %p2536_p2, %p2530_p13 }
  0x41   :  { %2540 = shalt.err (!%p2537_p3)
}
  0x42   :  { %57 = dma.hbm_to_vmem [thread:$0]  %s2862_s3, 512, %s52_s10, [#allocation9], %s2550_s0, %s2550_s0, %s2551_s24  }
  0x43   :  { %2541 = dma.done.wait [#allocation4], 128  }
  0x44   :  { %2542 = vsyncadd [#allocation4], 4294967168 }
  0x45   :  { %2543 = dma.done.wait [#allocation6], 640  }
  0x46   :  { %2544 = vsyncadd [#allocation6], 4294966656 }
  0x47   :  { %2545 = dma.done.wait [#allocation9], 512  }
  0x48   :  { %2546 = vsyncadd [#allocation9], 4294966784  ;;  %v2553_v0 = vmov 0.0|0.0   ;;  %vm2554_vm0 = vmmov 0   ;;  %v2555_v1 = vmov 0.0   ;;  %v81_v2 = vld [vmem:[#allocation7] sm:$0xff]  ;;  %v259_v27 = vlaneseq }
  0x49   :  { %2218 = vmatprep.subr.bf16.mxu1 %v2553_v0  ;;  %2042 = vmatprep.mubr.msk.f32.mxu1 %vm2554_vm0, %v2555_v1  ;;  %v82_v3 = vld [vmem:[#allocation7 + $0x8] sm:$0xff]  ;;  %v173_v4 = vld [vmem:[#allocation8] sm:$0xff]  ;;  %vm75_vm1 = vcmask 261120   ;;  %v83_v7 = vld [vmem:[#allocation7 + $0x10] sm:$0xff]  ;;  %s2556_s21 = smov 96   ;;  %vm1887_vm2 = vcmask 261127  }
  0x4a   :  { %v2210_v5 = vpack.c.bf16 %v82_v3, %v81_v2  ;;  %v174_v6 = vld [vmem:[#allocation8 + $0x8] sm:$0xff]  ;;  %v84_v8 = vld [vmem:[#allocation7 + $0x18] sm:$0xff]  ;;  %v74_v11 = vld [vmem:[#allocation3] sm:$0xff]  ;;  %v260_v28 = vshrl.u32 %v259_v27, 7  ;;  %vm1893_vm3 = vcmask 523527  }
  0x4b   :  { %v2644_v9 = vpack.c.bf16 %v174_v6, %v173_v4  ;;  %v2214_v10 = vpack.c.bf16 %v84_v8, %v83_v7  ;;  %v175_v12 = vld [vmem:[#allocation8 + $0x10] sm:$0xff]  ;;  %v176_v13 = vld [vmem:[#allocation8 + $0x18] sm:$0xff]  ;;  %76 = vst.msk [vmem:[#allocation2] sm:$0xff] %vm75_vm1, %v74_v11 }
  0x4c   :  { %2211 = vmatprep.subr.bf16.mxu0 %v2210_v5  ;;  %v77_v14 = vld [vmem:[#allocation5] sm:$0xff]  ;;  %v2648_v15 = vpack.c.bf16 %v176_v13, %v175_v12  ;;  %v261_v29 = vsub.s32 0, %v260_v28 }
  0x4d   :  { %2213 = vmatpush3.bf16.msra.mxu0 %v2210_v5  ;;  %2220 = vmatpush3.bf16.msra.mxu1 %v2644_v9  ;;  %78 = vst.msk [vmem:[#allocation2 + $0x8] sm:$0xff] %vm75_vm1, %v77_v14  ;;  %v177_v16 = vld [vmem:[%s2864_s5] sm:$0x1] }
  0x4e   :  { %2215 = vmatprep.subr.bf16.mxu0 %v2214_v10  ;;  %2221 = vmatprep.subr.bf16.mxu1 %v2553_v0  ;;  %v1902_v19 = vld [vmem:[%s2863_s4] ss:$0 sm:$0xff]  ;;  %v262_v31 = vrot.slane %v177_v16, %v261_v29  ;;  %s2557_s4 = smov 32  }
  0x51   :  { %2217 = vmatpush3.bf16.msra.mxu0 %v2214_v10  ;;  %2223 = vmatpush3.bf16.msra.mxu1 %v2648_v15 }
  0x52   :  { %2224 = vmatprep.subr.bf16.mxu0 %v2553_v0  ;;  %2230 = vmatprep.subr.bf16.mxu1 %v2553_v0  ;;  %v79_v17 = vld [vmem:[#allocation2] sm:$0xff] }
  0x53   :  { %2031 = vmatprep.mubr.msk.f32.mxu0 %vm75_vm1, %v79_v17 }
  0x54   :  { %v80_v18 = vld [vmem:[#allocation2 + $0x8] sm:$0xff]  ;;  %2043 = vmatmul.mubr.msk.f32.vlgmr.msra.gmra.mrb[0].mxu1 %vm75_vm1, %v177_v16 }
  0x55   :  { %2032 = vmatmul.mubr.msk.f32.vlgmr.msra.gmra.mrb[0].mxu0 %vm75_vm1, %v80_v18  ;;  %2232 = vmatpush3.bf16.msra.mxu1 %v2644_v9 }
  0x56   :  { %2226 = vmatpush3.bf16.msra.mxu0 %v2644_v9  ;;  %2053 = vmatprep.mubr.msk.f32.mxu0 %vm2554_vm0, %v2555_v1 }
  0x57   :  { %2227 = vmatprep.subr.bf16.mxu0 %v2553_v0  ;;  %2233 = vmatprep.subr.bf16.mxu1 %v2553_v0 }
  0x58   :  { %2064 = vmatprep.mubr.msk.f32.mxu1 %vm2554_vm0, %v2555_v1 }
  0x59   :  { %2235 = vmatpush3.bf16.msra.mxu1 %v2648_v15 }
  0x5a   :  { %2229 = vmatpush3.bf16.msra.mxu0 %v2648_v15  ;;  %2242 = vmatprep.subr.bf16.mxu1 %v2553_v0 }
  0x5b   :  { %2236 = vmatprep.subr.bf16.mxu0 %v2553_v0 }
 0x127   :  { %v247_v20 = vpop.f32.mrb[0].mxu1 }
 0x128   :  { %v2033_v21 = vpop.f32.mrb[0].mxu0  ;;  %v2044_v22 = vpop.f32.mrb[1].mxu1 }
 0x129   :  { %v2676_v23 = vadd.f32 %v2033_v21, %v1902_v19  ;;  %v164_v24 = vpop.f32.mrb[1].mxu0 }
 0x12a   :  { %v2678_v25 = vadd.f32 %v1902_v19, %v164_v24 }
 0x12c   :  { %v251_v26 = vadd.f32 %v247_v20, %v2678_v25 }
 0x12e   :  { %2325 = vtanh.f32 %v251_v26  ;;  %v1906_v32 = vmul.f32 -1.442695, %v251_v26 }
 0x130   :  { %2327 = vpow2.f32 %v1906_v32 }
 0x138   :  { %v2326_v30 = vpop.eup %2325 }
 0x139   :  { %268 = vrot.lane.b32.xlu0 %v2326_v30, %s2556_s21 }
 0x13a   :  { %v2328_v33 = vpop.eup %2327 }
 0x13b   :  { %v255_v34 = vadd.f32 1.0, %v2328_v33 }
 0x13d   :  { %263 = vrot.lane.b32.xlu0 %v262_v31, %s2556_s21  ;;  %2329 = vrcp.f32 %v255_v34 }
 0x147   :  { %v2330_v35 = vpop.eup %2329 }
 0x1ab   :  { %v269_v36 = vpop.permute.xlu0 %268 }
 0x1ac   :  { %v271_v37 = vmul.f32 %v2330_v35, %v269_v36 }
 0x1ae   :  { %273 = vrot.lane.b32.xlu1 %v271_v37, %s2556_s21 }
 0x1af   :  { %v264_v38 = vpop.permute.xlu0 %263 }
 0x1b0   :  { %v266_v39 = vmul.f32 %v2330_v35, %v264_v38 }
 0x220   :  { %v274_v40 = vpop.permute.xlu1 %273 }
 0x221   :  { %v276_v41 = vadd.f32 %v274_v40, %v266_v39 }
 0x223   :  { %2331 = vtanh.f32 %v276_v41  ;;  %v370_v57 = vrot.slane %v276_v41, 7 }
 0x22d   :  { %v2332_v42 = vpop.eup %2331 }
 0x22e   :  { %279 = vrot.lane.b32.xlu1 %v2332_v42, %s2556_s21 }
 0x2a0   :  { %v280_v43 = vpop.permute.xlu1 %279 }
 0x2a1   :  { %v282_v44 = vmul.f32 %v2330_v35, %v280_v43 }
 0x2a3   :  { %284 = vrot.lane.b32.xlu0 %v282_v44, %s2557_s4 }
 0x315   :  { %v285_v45 = vpop.permute.xlu0 %284 }
 0x316   :  { %2054 = vmatmul.mubr.msk.f32.vlgmr.msra.gmra.mrb[2].mxu0 %vm75_vm1, %v285_v45 }
 0x317   :  { %2238 = vmatpush3.bf16.msra.mxu0 %v2644_v9  ;;  %2075 = vmatprep.mubr.msk.f32.mxu0 %vm2554_vm0, %v2555_v1 }
 0x318   :  { %2239 = vmatprep.subr.bf16.mxu0 %v2553_v0 }
 0x31b   :  { %2241 = vmatpush3.bf16.msra.mxu0 %v2648_v15 }
 0x31c   :  { %2248 = vmatprep.subr.bf16.mxu0 %v2553_v0 }
 0x3e9   :  { %v354_v46 = vpop.f32.mrb[2].mxu0 }
 0x3ea   :  { %v359_v47 = vrot.slane %v354_v46, 7  ;;  %v2055_v48 = vpop.f32.mrb[3].mxu0 }
 0x3ec   :  { %v361_v49 = vadd.f32 %v359_v47, %v2678_v25 }
 0x3ee   :  { %2333 = vtanh.f32 %v361_v49  ;;  %v1908_v51 = vmul.f32 -1.442695, %v361_v49 }
 0x3f0   :  { %2335 = vpow2.f32 %v1908_v51 }
 0x3f8   :  { %v2334_v50 = vpop.eup %2333 }
 0x3f9   :  { %374 = vrot.lane.b32.xlu1 %v2334_v50, %s2556_s21 }
 0x3fa   :  { %v2336_v52 = vpop.eup %2335 }
 0x3fb   :  { %v365_v53 = vadd.f32 1.0, %v2336_v52 }
 0x3fd   :  { %2337 = vrcp.f32 %v365_v53 }
 0x407   :  { %v2338_v54 = vpop.eup %2337 }
 0x408   :  { %v372_v58 = vmul.f32 %v2338_v54, %v370_v57 }
 0x46b   :  { %v375_v55 = vpop.permute.xlu1 %374 }
 0x46c   :  { %v377_v56 = vmul.f32 %v2338_v54, %v375_v55 }
 0x46e   :  { %379 = vrot.lane.b32.xlu0 %v377_v56, %s2556_s21 }
 0x4e0   :  { %v380_v59 = vpop.permute.xlu0 %379 }
 0x4e1   :  { %v382_v60 = vadd.f32 %v380_v59, %v372_v58 }
 0x4e3   :  { %2339 = vtanh.f32 %v382_v60  ;;  %v477_v17 = vrot.slane %v382_v60, 7 }
 0x4ed   :  { %v2340_v61 = vpop.eup %2339 }
 0x4ee   :  { %385 = vrot.lane.b32.xlu1 %v2340_v61, %s2556_s21 }
 0x560   :  { %v386_v62 = vpop.permute.xlu1 %385 }
 0x561   :  { %v388_v63 = vmul.f32 %v2338_v54, %v386_v62 }
 0x563   :  { %v390_v2 = vrot.slane %v388_v63, 1 }
 0x565   :  { %391 = vrot.lane.b32.xlu0 %v390_v2, %s2557_s4 }
 0x5d7   :  { %v392_v3 = vpop.permute.xlu0 %391 }
 0x5d8   :  { %2065 = vmatmul.mubr.msk.f32.vlgmr.msra.gmra.mrb[2].mxu1 %vm75_vm1, %v392_v3 }
 0x5d9   :  { %2244 = vmatpush3.bf16.msra.mxu1 %v2644_v9  ;;  %2086 = vmatprep.mubr.msk.f32.mxu1 %vm2554_vm0, %v2555_v1 }
 0x5da   :  { %2245 = vmatprep.subr.bf16.mxu1 %v2553_v0 }
 0x5dd   :  { %2247 = vmatpush3.bf16.msra.mxu1 %v2648_v15 }
 0x5de   :  { %2254 = vmatprep.subr.bf16.mxu1 %v2553_v0 }
 0x6ab   :  { %v461_v4 = vpop.f32.mrb[2].mxu1 }
 0x6ac   :  { %v466_v5 = vrot.slane %v461_v4, 6  ;;  %v2066_v6 = vpop.f32.mrb[3].mxu1 }
 0x6ae   :  { %v468_v7 = vadd.f32 %v466_v5, %v2678_v25 }
 0x6b0   :  { %2341 = vtanh.f32 %v468_v7  ;;  %v1910_v10 = vmul.f32 -1.442695, %v468_v7 }
 0x6b2   :  { %2343 = vpow2.f32 %v1910_v10 }
 0x6ba   :  { %v2342_v8 = vpop.eup %2341 }
 0x6bb   :  { %481 = vrot.lane.b32.xlu1 %v2342_v8, %s2556_s21 }
 0x6bc   :  { %v2344_v11 = vpop.eup %2343 }
 0x6bd   :  { %v472_v12 = vadd.f32 1.0, %v2344_v11 }
 0x6bf   :  { %2345 = vrcp.f32 %v472_v12 }
 0x6c9   :  { %v2346_v13 = vpop.eup %2345 }
 0x6ca   :  { %v479_v18 = vmul.f32 %v2346_v13, %v477_v17 }
 0x72d   :  { %v482_v14 = vpop.permute.xlu1 %481 }
 0x72e   :  { %v484_v16 = vmul.f32 %v2346_v13, %v482_v14 }
 0x730   :  { %486 = vrot.lane.b32.xlu0 %v484_v16, %s2556_s21 }
 0x7a2   :  { %v487_v19 = vpop.permute.xlu0 %486 }
 0x7a3   :  { %v489_v20 = vadd.f32 %v487_v19, %v479_v18 }
 0x7a5   :  { %2347 = vtanh.f32 %v489_v20  ;;  %v584_v39 = vrot.slane %v489_v20, 7 }
 0x7af   :  { %v2348_v21 = vpop.eup %2347 }
 0x7b0   :  { %492 = vrot.lane.b32.xlu1 %v2348_v21, %s2556_s21 }
 0x822   :  { %v493_v22 = vpop.permute.xlu1 %492 }
 0x823   :  { %v495_v24 = vmul.f32 %v2346_v13, %v493_v22 }
 0x825   :  { %v497_v26 = vrot.slane %v495_v24, 2 }
 0x827   :  { %498 = vrot.lane.b32.xlu0 %v497_v26, %s2557_s4 }
 0x899   :  { %v499_v27 = vpop.permute.xlu0 %498 }
 0x89a   :  { %2076 = vmatmul.mubr.msk.f32.vlgmr.msra.gmra.mrb[4].mxu0 %vm75_vm1, %v499_v27 }
 0x89b   :  { %2250 = vmatpush3.bf16.msra.mxu0 %v2644_v9  ;;  %2097 = vmatprep.mubr.msk.f32.mxu0 %vm2554_vm0, %v2555_v1 }
 0x89c   :  { %2251 = vmatprep.subr.bf16.mxu0 %v2553_v0 }
 0x89f   :  { %2253 = vmatpush3.bf16.msra.mxu0 %v2648_v15 }
 0x8a0   :  { %2260 = vmatprep.subr.bf16.mxu0 %v2553_v0 }
 0x96d   :  { %v568_v28 = vpop.f32.mrb[4].mxu0 }
 0x96e   :  { %v573_v29 = vrot.slane %v568_v28, 5  ;;  %v2077_v30 = vpop.f32.mrb[5].mxu0 }
 0x970   :  { %v575_v31 = vadd.f32 %v573_v29, %v2678_v25 }
 0x972   :  { %2349 = vtanh.f32 %v575_v31  ;;  %v1912_v33 = vmul.f32 -1.442695, %v575_v31 }
 0x974   :  { %2351 = vpow2.f32 %v1912_v33 }
 0x97c   :  { %v2350_v32 = vpop.eup %2349 }
 0x97d   :  { %588 = vrot.lane.b32.xlu1 %v2350_v32, %s2556_s21 }
 0x97e   :  { %v2352_v34 = vpop.eup %2351 }
 0x97f   :  { %v579_v35 = vadd.f32 1.0, %v2352_v34 }
 0x981   :  { %2353 = vrcp.f32 %v579_v35 }
 0x98b   :  { %v2354_v36 = vpop.eup %2353 }
 0x98c   :  { %v586_v40 = vmul.f32 %v2354_v36, %v584_v39 }
 0x9ef   :  { %v589_v37 = vpop.permute.xlu1 %588 }
 0x9f0   :  { %v591_v38 = vmul.f32 %v2354_v36, %v589_v37 }
 0x9f2   :  { %593 = vrot.lane.b32.xlu0 %v591_v38, %s2556_s21 }
 0xa64   :  { %v594_v41 = vpop.permute.xlu0 %593 }
 0xa65   :  { %v596_v42 = vadd.f32 %v594_v41, %v586_v40 }
 0xa67   :  { %2355 = vtanh.f32 %v596_v42  ;;  %v691_v59 = vrot.slane %v596_v42, 7 }
 0xa71   :  { %v2356_v43 = vpop.eup %2355 }
 0xa72   :  { %599 = vrot.lane.b32.xlu1 %v2356_v43, %s2556_s21 }
 0xae4   :  { %v600_v44 = vpop.permute.xlu1 %599 }
 0xae5   :  { %v602_v45 = vmul.f32 %v2354_v36, %v600_v44 }
 0xae7   :  { %v604_v46 = vrot.slane %v602_v45, 3 }
 0xae9   :  { %605 = vrot.lane.b32.xlu0 %v604_v46, %s2557_s4 }
 0xb5b   :  { %v606_v47 = vpop.permute.xlu0 %605 }
 0xb5c   :  { %2087 = vmatmul.mubr.msk.f32.vlgmr.msra.gmra.mrb[4].mxu1 %vm75_vm1, %v606_v47 }
 0xb5d   :  { %2256 = vmatpush3.bf16.msra.mxu1 %v2644_v9  ;;  %2108 = vmatprep.mubr.msk.f32.mxu1 %vm2554_vm0, %v2555_v1 }
 0xb5e   :  { %2257 = vmatprep.subr.bf16.mxu1 %v2553_v0 }
 0xb61   :  { %2259 = vmatpush3.bf16.msra.mxu1 %v2648_v15 }
 0xb62   :  { %2266 = vmatprep.subr.bf16.mxu1 %v2553_v0 }
 0xc2f   :  { %v675_v48 = vpop.f32.mrb[4].mxu1 }
 0xc30   :  { %v680_v49 = vrot.slane %v675_v48, 4  ;;  %v2088_v50 = vpop.f32.mrb[5].mxu1 }
 0xc32   :  { %v682_v51 = vadd.f32 %v680_v49, %v2678_v25 }
 0xc34   :  { %2357 = vtanh.f32 %v682_v51  ;;  %v1914_v53 = vmul.f32 -1.442695, %v682_v51 }
 0xc36   :  { %2359 = vpow2.f32 %v1914_v53 }
 0xc3e   :  { %v2358_v52 = vpop.eup %2357 }
 0xc3f   :  { %695 = vrot.lane.b32.xlu1 %v2358_v52, %s2556_s21 }
 0xc40   :  { %v2360_v54 = vpop.eup %2359 }
 0xc41   :  { %v686_v55 = vadd.f32 1.0, %v2360_v54 }
 0xc43   :  { %2361 = vrcp.f32 %v686_v55 }
 0xc4d   :  { %v2362_v56 = vpop.eup %2361 }
 0xc4e   :  { %v693_v60 = vmul.f32 %v2362_v56, %v691_v59 }
 0xcb1   :  { %v696_v57 = vpop.permute.xlu1 %695 }
 0xcb2   :  { %v698_v58 = vmul.f32 %v2362_v56, %v696_v57 }
 0xcb4   :  { %700 = vrot.lane.b32.xlu0 %v698_v58, %s2556_s21 }
 0xd26   :  { %v701_v61 = vpop.permute.xlu0 %700 }
 0xd27   :  { %v703_v62 = vadd.f32 %v701_v61, %v693_v60 }
 0xd29   :  { %2363 = vtanh.f32 %v703_v62  ;;  %v798_v19 = vrot.slane %v703_v62, 7 }
 0xd33   :  { %v2364_v63 = vpop.eup %2363 }
 0xd34   :  { %706 = vrot.lane.b32.xlu1 %v2364_v63, %s2556_s21 }
 0xda6   :  { %v707_v2 = vpop.permute.xlu1 %706 }
 0xda7   :  { %v709_v3 = vmul.f32 %v2362_v56, %v707_v2 }
 0xda9   :  { %v711_v4 = vrot.slane %v709_v3, 4 }
 0xdab   :  { %712 = vrot.lane.b32.xlu0 %v711_v4, %s2557_s4 }
 0xe1d   :  { %v713_v5 = vpop.permute.xlu0 %712 }
 0xe1e   :  { %2098 = vmatmul.mubr.msk.f32.vlgmr.msra.gmra.mrb[6].mxu0 %vm75_vm1, %v713_v5 }
 0xe1f   :  { %2262 = vmatpush3.bf16.msra.mxu0 %v2644_v9  ;;  %2119 = vmatprep.mubr.msk.f32.mxu0 %vm2554_vm0, %v2555_v1 }
 0xe20   :  { %2263 = vmatprep.subr.bf16.mxu0 %v2553_v0 }
 0xe23   :  { %2265 = vmatpush3.bf16.msra.mxu0 %v2648_v15 }
 0xe24   :  { %2272 = vmatprep.subr.bf16.mxu0 %v2553_v0 }
 0xef1   :  { %v782_v6 = vpop.f32.mrb[6].mxu0 }
 0xef2   :  { %v787_v7 = vrot.slane %v782_v6, 3  ;;  %v2099_v8 = vpop.f32.mrb[7].mxu0 }
 0xef4   :  { %v789_v10 = vadd.f32 %v787_v7, %v2678_v25 }
 0xef6   :  { %2365 = vtanh.f32 %v789_v10  ;;  %v1916_v12 = vmul.f32 -1.442695, %v789_v10 }
 0xef8   :  { %2367 = vpow2.f32 %v1916_v12 }
 0xf00   :  { %v2366_v11 = vpop.eup %2365 }
 0xf01   :  { %802 = vrot.lane.b32.xlu1 %v2366_v11, %s2556_s21 }
 0xf02   :  { %v2368_v13 = vpop.eup %2367 }
 0xf03   :  { %v793_v14 = vadd.f32 1.0, %v2368_v13 }
 0xf05   :  { %2369 = vrcp.f32 %v793_v14 }
 0xf0f   :  { %v2370_v16 = vpop.eup %2369 }
 0xf10   :  { %v800_v20 = vmul.f32 %v2370_v16, %v798_v19 }
 0xf73   :  { %v803_v17 = vpop.permute.xlu1 %802 }
 0xf74   :  { %v805_v18 = vmul.f32 %v2370_v16, %v803_v17 }
 0xf76   :  { %807 = vrot.lane.b32.xlu0 %v805_v18, %s2556_s21 }
 0xfe8   :  { %v808_v21 = vpop.permute.xlu0 %807 }
 0xfe9   :  { %v810_v22 = vadd.f32 %v808_v21, %v800_v20 }
 0xfeb   :  { %2371 = vtanh.f32 %v810_v22  ;;  %v905_v41 = vrot.slane %v810_v22, 7 }
 0xff5   :  { %v2372_v24 = vpop.eup %2371 }
 0xff6   :  { %813 = vrot.lane.b32.xlu1 %v2372_v24, %s2556_s21 }
0x1068   :  { %v814_v26 = vpop.permute.xlu1 %813 }
0x1069   :  { %v816_v27 = vmul.f32 %v2370_v16, %v814_v26 }
0x106b   :  { %v818_v28 = vrot.slane %v816_v27, 5 }
0x106d   :  { %819 = vrot.lane.b32.xlu0 %v818_v28, %s2557_s4 }
0x10df   :  { %v820_v29 = vpop.permute.xlu0 %819 }
0x10e0   :  { %2109 = vmatmul.mubr.msk.f32.vlgmr.msra.gmra.mrb[6].mxu1 %vm75_vm1, %v820_v29 }
0x10e1   :  { %2268 = vmatpush3.bf16.msra.mxu1 %v2644_v9  ;;  %2130 = vmatprep.mubr.msk.f32.mxu1 %vm2554_vm0, %v2555_v1 }
0x10e2   :  { %2269 = vmatprep.subr.bf16.mxu1 %v2553_v0 }
0x10e5   :  { %2271 = vmatpush3.bf16.msra.mxu1 %v2648_v15 }
0x10e6   :  { %2278 = vmatprep.subr.bf16.mxu1 %v2553_v0 }
0x11b3   :  { %v889_v30 = vpop.f32.mrb[6].mxu1 }
0x11b4   :  { %v894_v31 = vrot.slane %v889_v30, 2  ;;  %v2110_v32 = vpop.f32.mrb[7].mxu1 }
0x11b6   :  { %v896_v33 = vadd.f32 %v894_v31, %v2678_v25 }
0x11b8   :  { %2373 = vtanh.f32 %v896_v33  ;;  %v1918_v35 = vmul.f32 -1.442695, %v896_v33 }
0x11ba   :  { %2375 = vpow2.f32 %v1918_v35 }
0x11c2   :  { %v2374_v34 = vpop.eup %2373 }
0x11c3   :  { %909 = vrot.lane.b32.xlu1 %v2374_v34, %s2556_s21 }
0x11c4   :  { %v2376_v36 = vpop.eup %2375 }
0x11c5   :  { %v900_v37 = vadd.f32 1.0, %v2376_v36 }
0x11c7   :  { %2377 = vrcp.f32 %v900_v37 }
0x11d1   :  { %v2378_v38 = vpop.eup %2377 }
0x11d2   :  { %v907_v42 = vmul.f32 %v2378_v38, %v905_v41 }
0x1235   :  { %v910_v39 = vpop.permute.xlu1 %909 }
0x1236   :  { %v912_v40 = vmul.f32 %v2378_v38, %v910_v39 }
0x1238   :  { %914 = vrot.lane.b32.xlu0 %v912_v40, %s2556_s21 }
0x12aa   :  { %v915_v43 = vpop.permute.xlu0 %914 }
0x12ab   :  { %v917_v44 = vadd.f32 %v915_v43, %v907_v42 }
0x12ad   :  { %2379 = vtanh.f32 %v917_v44  ;;  %v1012_v61 = vrot.slane %v917_v44, 7 }
0x12b7   :  { %v2380_v45 = vpop.eup %2379 }
0x12b8   :  { %920 = vrot.lane.b32.xlu1 %v2380_v45, %s2556_s21 }
0x132a   :  { %v921_v46 = vpop.permute.xlu1 %920 }
0x132b   :  { %v923_v47 = vmul.f32 %v2378_v38, %v921_v46 }
0x132d   :  { %v925_v48 = vrot.slane %v923_v47, 6 }
0x132f   :  { %926 = vrot.lane.b32.xlu0 %v925_v48, %s2557_s4 }
0x13a1   :  { %v927_v49 = vpop.permute.xlu0 %926 }
0x13a2   :  { %2120 = vmatmul.mubr.msk.f32.vlgmr.msra.gmra.mrb[8].mxu0 %vm75_vm1, %v927_v49 }
0x13a3   :  { %2274 = vmatpush3.bf16.msra.mxu0 %v2644_v9  ;;  %2141 = vmatprep.mubr.msk.f32.mxu0 %vm2554_vm0, %v2555_v1 }
0x13a4   :  { %2275 = vmatprep.subr.bf16.mxu0 %v2553_v0 }
0x13a7   :  { %2277 = vmatpush3.bf16.msra.mxu0 %v2648_v15 }
0x13a8   :  { %2284 = vmatprep.subr.bf16.mxu0 %v2553_v0 }
0x1475   :  { %v996_v50 = vpop.f32.mrb[8].mxu0 }
0x1476   :  { %v1001_v51 = vrot.slane %v996_v50, 1  ;;  %v2121_v52 = vpop.f32.mrb[9].mxu0 }
0x1478   :  { %v1003_v53 = vadd.f32 %v1001_v51, %v2678_v25 }
0x147a   :  { %2381 = vtanh.f32 %v1003_v53  ;;  %v1920_v55 = vmul.f32 -1.442695, %v1003_v53 }
0x147c   :  { %2383 = vpow2.f32 %v1920_v55 }
0x1484   :  { %v2382_v54 = vpop.eup %2381 }
0x1485   :  { %1016 = vrot.lane.b32.xlu1 %v2382_v54, %s2556_s21 }
0x1486   :  { %v2384_v56 = vpop.eup %2383 }
0x1487   :  { %v1007_v57 = vadd.f32 1.0, %v2384_v56 }
0x1489   :  { %2385 = vrcp.f32 %v1007_v57 }
0x1493   :  { %v2386_v58 = vpop.eup %2385 }
0x1494   :  { %v1014_v62 = vmul.f32 %v2386_v58, %v1012_v61 }
0x14f7   :  { %v1017_v59 = vpop.permute.xlu1 %1016 }
0x14f8   :  { %v1019_v60 = vmul.f32 %v2386_v58, %v1017_v59 }
0x14fa   :  { %1021 = vrot.lane.b32.xlu0 %v1019_v60, %s2556_s21 }
0x156c   :  { %v1022_v63 = vpop.permute.xlu0 %1021 }
0x156d   :  { %v1024_v2 = vadd.f32 %v1022_v63, %v1014_v62 }
0x156f   :  { %2387 = vtanh.f32 %v1024_v2  ;;  %v1116_v19 = vrot.slane %v1024_v2, 7 }
0x1579   :  { %v2388_v25 = vpop.eup %2387 }
0x157a   :  { %1027 = vrot.lane.b32.xlu1 %v2388_v25, %s2556_s21 }
0x15ec   :  { %v1028_v3 = vpop.permute.xlu1 %1027 }
0x15ed   :  { %v1030_v4 = vmul.f32 %v2386_v58, %v1028_v3 }
0x15ef   :  { %v1032_v5 = vrot.slane %v1030_v4, 7 }
0x15f1   :  { %1033 = vrot.lane.b32.xlu0 %v1032_v5, %s2557_s4 }
0x1663   :  { %v1034_v6 = vpop.permute.xlu0 %1033 }
0x1664   :  { %2131 = vmatmul.mubr.msk.f32.vlgmr.msra.gmra.mrb[8].mxu1 %vm75_vm1, %v1034_v6 }
0x1665   :  { %2280 = vmatpush3.bf16.msra.mxu1 %v2644_v9  ;;  %2152 = vmatprep.mubr.msk.f32.mxu1 %vm2554_vm0, %v2555_v1 }
0x1666   :  { %2281 = vmatprep.subr.bf16.mxu1 %v2553_v0 }
0x1669   :  { %2283 = vmatpush3.bf16.msra.mxu1 %v2648_v15 }
0x166a   :  { %2290 = vmatprep.subr.bf16.mxu1 %v2553_v0 }
0x1737   :  { %v1103_v7 = vpop.f32.mrb[8].mxu1 }
0x1738   :  { %v1107_v8 = vadd.f32 %v1103_v7, %v2676_v23  ;;  %v2132_v10 = vpop.f32.mrb[9].mxu1 }
0x173a   :  { %2389 = vtanh.f32 %v1107_v8  ;;  %v1922_v12 = vmul.f32 -1.442695, %v1107_v8 }
0x173c   :  { %2391 = vpow2.f32 %v1922_v12 }
0x1744   :  { %v2390_v11 = vpop.eup %2389 }
0x1745   :  { %1120 = vrot.lane.b32.xlu1 %v2390_v11, %s2556_s21 }
0x1746   :  { %v2392_v13 = vpop.eup %2391 }
0x1747   :  { %v1111_v14 = vadd.f32 1.0, %v2392_v13 }
0x1749   :  { %2393 = vrcp.f32 %v1111_v14 }
0x1753   :  { %v2394_v16 = vpop.eup %2393 }
0x1754   :  { %v1118_v20 = vmul.f32 %v2394_v16, %v1116_v19 }
0x17b7   :  { %v1121_v17 = vpop.permute.xlu1 %1120 }
0x17b8   :  { %v1123_v18 = vmul.f32 %v2394_v16, %v1121_v17 }
0x17ba   :  { %1125 = vrot.lane.b32.xlu0 %v1123_v18, %s2556_s21 }
0x182c   :  { %v1126_v21 = vpop.permute.xlu0 %1125 }
0x182d   :  { %v1128_v22 = vadd.f32 %v1126_v21, %v1118_v20 }
0x182f   :  { %2395 = vtanh.f32 %v1128_v22  ;;  %v1222_v40 = vrot.slane %v1128_v22, 7 }
0x1839   :  { %v2396_v24 = vpop.eup %2395 }
0x183a   :  { %1131 = vrot.lane.b32.xlu1 %v2396_v24, %s2556_s21 }
0x18ac   :  { %v1132_v26 = vpop.permute.xlu1 %1131 }
0x18ad   :  { %v1134_v27 = vmul.f32 %v2394_v16, %v1132_v26 }
0x18af   :  { %1136 = vrot.lane.b32.xlu0 %v1134_v27, %s2557_s4 }
0x1921   :  { %v1137_v28 = vpop.permute.xlu0 %1136 }
0x1922   :  { %2142 = vmatmul.mubr.msk.f32.vlgmr.msra.gmra.mrb[10].mxu0 %vm75_vm1, %v1137_v28 }
0x1923   :  { %2286 = vmatpush3.bf16.msra.mxu0 %v2644_v9  ;;  %2163 = vmatprep.mubr.msk.f32.mxu0 %vm2554_vm0, %v2555_v1 }
0x1924   :  { %2287 = vmatprep.subr.bf16.mxu0 %v2553_v0 }
0x1927   :  { %2289 = vmatpush3.bf16.msra.mxu0 %v2648_v15 }
0x1928   :  { %2296 = vmatprep.subr.bf16.mxu0 %v2553_v0 }
0x19f5   :  { %v1206_v29 = vpop.f32.mrb[10].mxu0 }
0x19f6   :  { %v1211_v30 = vrot.slane %v1206_v29, 7  ;;  %v2143_v31 = vpop.f32.mrb[11].mxu0 }
0x19f8   :  { %v1213_v32 = vadd.f32 %v1211_v30, %v2676_v23 }
0x19fa   :  { %2397 = vtanh.f32 %v1213_v32  ;;  %v1924_v34 = vmul.f32 -1.442695, %v1213_v32 }
0x19fc   :  { %2399 = vpow2.f32 %v1924_v34 }
0x1a04   :  { %v2398_v33 = vpop.eup %2397 }
0x1a05   :  { %1226 = vrot.lane.b32.xlu1 %v2398_v33, %s2556_s21 }
0x1a06   :  { %v2400_v35 = vpop.eup %2399 }
0x1a07   :  { %v1217_v36 = vadd.f32 1.0, %v2400_v35 }
0x1a09   :  { %2401 = vrcp.f32 %v1217_v36 }
0x1a13   :  { %v2402_v37 = vpop.eup %2401 }
0x1a14   :  { %v1224_v41 = vmul.f32 %v2402_v37, %v1222_v40 }
0x1a77   :  { %v1227_v38 = vpop.permute.xlu1 %1226 }
0x1a78   :  { %v1229_v39 = vmul.f32 %v2402_v37, %v1227_v38 }
0x1a7a   :  { %1231 = vrot.lane.b32.xlu0 %v1229_v39, %s2556_s21 }
0x1aec   :  { %v1232_v42 = vpop.permute.xlu0 %1231 }
0x1aed   :  { %v1234_v43 = vadd.f32 %v1232_v42, %v1224_v41 }
0x1aef   :  { %2403 = vtanh.f32 %v1234_v43  ;;  %v1329_v60 = vrot.slane %v1234_v43, 7 }
0x1af9   :  { %v2404_v44 = vpop.eup %2403 }
0x1afa   :  { %1237 = vrot.lane.b32.xlu1 %v2404_v44, %s2556_s21 }
0x1b6c   :  { %v1238_v45 = vpop.permute.xlu1 %1237 }
0x1b6d   :  { %v1240_v46 = vmul.f32 %v2402_v37, %v1238_v45 }
0x1b6f   :  { %v1242_v47 = vrot.slane %v1240_v46, 1 }
0x1b71   :  { %1243 = vrot.lane.b32.xlu0 %v1242_v47, %s2557_s4 }
0x1be3   :  { %v1244_v48 = vpop.permute.xlu0 %1243 }
0x1be4   :  { %2153 = vmatmul.mubr.msk.f32.vlgmr.msra.gmra.mrb[10].mxu1 %vm75_vm1, %v1244_v48 }
0x1be5   :  { %2292 = vmatpush3.bf16.msra.mxu1 %v2644_v9  ;;  %2174 = vmatprep.mubr.msk.f32.mxu1 %vm2554_vm0, %v2555_v1 }
0x1be6   :  { %2293 = vmatprep.subr.bf16.mxu1 %v2553_v0 }
0x1be9   :  { %2295 = vmatpush3.bf16.msra.mxu1 %v2648_v15 }
0x1bea   :  { %2302 = vmatprep.subr.bf16.mxu1 %v2553_v0 }
0x1cb7   :  { %v1313_v49 = vpop.f32.mrb[10].mxu1 }
0x1cb8   :  { %v1318_v50 = vrot.slane %v1313_v49, 6  ;;  %v2154_v51 = vpop.f32.mrb[11].mxu1 }
0x1cba   :  { %v1320_v52 = vadd.f32 %v1318_v50, %v2676_v23 }
0x1cbc   :  { %2405 = vtanh.f32 %v1320_v52  ;;  %v1926_v54 = vmul.f32 -1.442695, %v1320_v52 }
0x1cbe   :  { %2407 = vpow2.f32 %v1926_v54 }
0x1cc6   :  { %v2406_v53 = vpop.eup %2405 }
0x1cc7   :  { %1333 = vrot.lane.b32.xlu1 %v2406_v53, %s2556_s21 }
0x1cc8   :  { %v2408_v55 = vpop.eup %2407 }
0x1cc9   :  { %v1324_v56 = vadd.f32 1.0, %v2408_v55 }
0x1ccb   :  { %2409 = vrcp.f32 %v1324_v56 }
0x1cd5   :  { %v2410_v57 = vpop.eup %2409 }
0x1cd6   :  { %v1331_v61 = vmul.f32 %v2410_v57, %v1329_v60 }
0x1d39   :  { %v1334_v58 = vpop.permute.xlu1 %1333 }
0x1d3a   :  { %v1336_v59 = vmul.f32 %v2410_v57, %v1334_v58 }
0x1d3c   :  { %1338 = vrot.lane.b32.xlu0 %v1336_v59, %s2556_s21 }
0x1dae   :  { %v1339_v62 = vpop.permute.xlu0 %1338 }
0x1daf   :  { %v1341_v63 = vadd.f32 %v1339_v62, %v1331_v61 }
0x1db1   :  { %2411 = vtanh.f32 %v1341_v63  ;;  %v1436_v19 = vrot.slane %v1341_v63, 7 }
0x1dbb   :  { %v2412_v2 = vpop.eup %2411 }
0x1dbc   :  { %1344 = vrot.lane.b32.xlu1 %v2412_v2, %s2556_s21 }
0x1e2e   :  { %v1345_v25 = vpop.permute.xlu1 %1344 }
0x1e2f   :  { %v1347_v3 = vmul.f32 %v2410_v57, %v1345_v25 }
0x1e31   :  { %v1349_v4 = vrot.slane %v1347_v3, 2 }
0x1e33   :  { %1350 = vrot.lane.b32.xlu0 %v1349_v4, %s2557_s4 }
0x1ea5   :  { %v1351_v5 = vpop.permute.xlu0 %1350 }
0x1ea6   :  { %2164 = vmatmul.mubr.msk.f32.vlgmr.msra.gmra.mrb[12].mxu0 %vm75_vm1, %v1351_v5 }
0x1ea7   :  { %2298 = vmatpush3.bf16.msra.mxu0 %v2644_v9  ;;  %2185 = vmatprep.mubr.msk.f32.mxu0 %vm2554_vm0, %v2555_v1 }
0x1ea8   :  { %2299 = vmatprep.subr.bf16.mxu0 %v2553_v0 }
0x1eab   :  { %2301 = vmatpush3.bf16.msra.mxu0 %v2648_v15 }
0x1eac   :  { %2308 = vmatprep.subr.bf16.mxu0 %v2553_v0 }
0x1f79   :  { %v1420_v6 = vpop.f32.mrb[12].mxu0 }
0x1f7a   :  { %v1425_v7 = vrot.slane %v1420_v6, 5  ;;  %v2165_v8 = vpop.f32.mrb[13].mxu0 }
0x1f7c   :  { %v1427_v10 = vadd.f32 %v1425_v7, %v2676_v23 }
0x1f7e   :  { %2413 = vtanh.f32 %v1427_v10  ;;  %v1928_v12 = vmul.f32 -1.442695, %v1427_v10 }
0x1f80   :  { %2415 = vpow2.f32 %v1928_v12 }
0x1f88   :  { %v2414_v11 = vpop.eup %2413 }
0x1f89   :  { %1440 = vrot.lane.b32.xlu1 %v2414_v11, %s2556_s21 }
0x1f8a   :  { %v2416_v13 = vpop.eup %2415 }
0x1f8b   :  { %v1431_v14 = vadd.f32 1.0, %v2416_v13 }
0x1f8d   :  { %2417 = vrcp.f32 %v1431_v14 }
0x1f97   :  { %v2418_v16 = vpop.eup %2417 }
0x1f98   :  { %v1438_v20 = vmul.f32 %v2418_v16, %v1436_v19 }
0x1ffb   :  { %v1441_v17 = vpop.permute.xlu1 %1440 }
0x1ffc   :  { %v1443_v18 = vmul.f32 %v2418_v16, %v1441_v17 }
0x1ffe   :  { %1445 = vrot.lane.b32.xlu0 %v1443_v18, %s2556_s21 }
0x2070   :  { %v1446_v21 = vpop.permute.xlu0 %1445 }
0x2071   :  { %v1448_v22 = vadd.f32 %v1446_v21, %v1438_v20 }
0x2073   :  { %2419 = vtanh.f32 %v1448_v22  ;;  %v1543_v41 = vrot.slane %v1448_v22, 7 }
0x207d   :  { %v2420_v24 = vpop.eup %2419 }
0x207e   :  { %1451 = vrot.lane.b32.xlu1 %v2420_v24, %s2556_s21 }
0x20f0   :  { %v1452_v26 = vpop.permute.xlu1 %1451 }
0x20f1   :  { %v1454_v27 = vmul.f32 %v2418_v16, %v1452_v26 }
0x20f3   :  { %v1456_v28 = vrot.slane %v1454_v27, 3 }
0x20f5   :  { %1457 = vrot.lane.b32.xlu0 %v1456_v28, %s2557_s4 }
0x2167   :  { %v1458_v29 = vpop.permute.xlu0 %1457 }
0x2168   :  { %2175 = vmatmul.mubr.msk.f32.vlgmr.msra.gmra.mrb[12].mxu1 %vm75_vm1, %v1458_v29 }
0x2169   :  { %2304 = vmatpush3.bf16.msra.mxu1 %v2644_v9  ;;  %2196 = vmatprep.mubr.msk.f32.mxu1 %vm2554_vm0, %v2555_v1 }
0x216a   :  { %2305 = vmatprep.subr.bf16.mxu1 %v2553_v0 }
0x216d   :  { %2307 = vmatpush3.bf16.msra.mxu1 %v2648_v15 }
0x223b   :  { %v1527_v30 = vpop.f32.mrb[12].mxu1 }
0x223c   :  { %v1532_v31 = vrot.slane %v1527_v30, 4  ;;  %v2176_v32 = vpop.f32.mrb[13].mxu1 }
0x223e   :  { %v1534_v33 = vadd.f32 %v1532_v31, %v2676_v23 }
0x2240   :  { %2421 = vtanh.f32 %v1534_v33  ;;  %v1930_v35 = vmul.f32 -1.442695, %v1534_v33 }
0x2242   :  { %2423 = vpow2.f32 %v1930_v35 }
0x224a   :  { %v2422_v34 = vpop.eup %2421 }
0x224b   :  { %1547 = vrot.lane.b32.xlu1 %v2422_v34, %s2556_s21 }
0x224c   :  { %v2424_v36 = vpop.eup %2423 }
0x224d   :  { %v1538_v37 = vadd.f32 1.0, %v2424_v36 }
0x224f   :  { %2425 = vrcp.f32 %v1538_v37 }
0x2259   :  { %v2426_v38 = vpop.eup %2425 }
0x225a   :  { %v1545_v42 = vmul.f32 %v2426_v38, %v1543_v41 }
0x22bd   :  { %v1548_v39 = vpop.permute.xlu1 %1547 }
0x22be   :  { %v1550_v40 = vmul.f32 %v2426_v38, %v1548_v39 }
0x22c0   :  { %1552 = vrot.lane.b32.xlu0 %v1550_v40, %s2556_s21 }
0x2332   :  { %v1553_v43 = vpop.permute.xlu0 %1552 }
0x2333   :  { %v1555_v44 = vadd.f32 %v1553_v43, %v1545_v42 }
0x2335   :  { %2427 = vtanh.f32 %v1555_v44 }
0x233f   :  { %v2428_v45 = vpop.eup %2427 }
0x2340   :  { %1558 = vrot.lane.b32.xlu1 %v2428_v45, %s2556_s21 }
0x23b2   :  { %v1559_v46 = vpop.permute.xlu1 %1558 }
0x23b3   :  { %v1561_v47 = vmul.f32 %v2426_v38, %v1559_v46 }
0x23b5   :  { %v1563_v48 = vrot.slane %v1561_v47, 4 }
0x23b7   :  { %1564 = vrot.lane.b32.xlu0 %v1563_v48, %s2557_s4 }
0x2429   :  { %v1565_v49 = vpop.permute.xlu0 %1564 }
0x242a   :  { %2186 = vmatmul.mubr.msk.f32.vlgmr.msra.gmra.mrb[14].mxu0 %vm75_vm1, %v1565_v49 }
0x242b   :  { %2310 = vmatpush3.bf16.msra.mxu0 %v2644_v9  ;;  %2207 = vmatprep.mubr.msk.f32.mxu0 %vm2554_vm0, %v2555_v1 }
0x242c   :  { %2311 = vmatprep.subr.bf16.mxu0 %v2553_v0  ;;  %v1650_v0 = vrot.slane %v1555_v44, 7 }
0x242f   :  { %2313 = vmatpush3.bf16.msra.mxu0 %v2648_v15 }
0x24fd   :  { %v1634_v50 = vpop.f32.mrb[14].mxu0 }
0x24fe   :  { %v1639_v51 = vrot.slane %v1634_v50, 3  ;;  %v2187_v52 = vpop.f32.mrb[15].mxu0 }
0x2500   :  { %v1641_v53 = vadd.f32 %v1639_v51, %v2676_v23 }
0x2502   :  { %2429 = vtanh.f32 %v1641_v53  ;;  %v1932_v55 = vmul.f32 -1.442695, %v1641_v53 }
0x2504   :  { %2431 = vpow2.f32 %v1932_v55 }
0x250c   :  { %v2430_v54 = vpop.eup %2429 }
0x250d   :  { %1654 = vrot.lane.b32.xlu1 %v2430_v54, %s2556_s21 }
0x250e   :  { %v2432_v56 = vpop.eup %2431 }
0x250f   :  { %v1645_v9 = vadd.f32 1.0, %v2432_v56 }
0x2511   :  { %2433 = vrcp.f32 %v1645_v9 }
0x251b   :  { %v2434_v57 = vpop.eup %2433 }
0x251c   :  { %v1652_v15 = vmul.f32 %v2434_v57, %v1650_v0 }
0x257f   :  { %v1655_v1 = vpop.permute.xlu1 %1654 }
0x2580   :  { %v1657_v58 = vmul.f32 %v2434_v57, %v1655_v1 }
0x2582   :  { %1659 = vrot.lane.b32.xlu0 %v1657_v58, %s2556_s21 }
0x25f4   :  { %v1660_v59 = vpop.permute.xlu0 %1659 }
0x25f5   :  { %v1662_v60 = vadd.f32 %v1660_v59, %v1652_v15 }
0x25f7   :  { %2435 = vtanh.f32 %v1662_v60  ;;  %v1757_v16 = vrot.slane %v1662_v60, 7 }
0x2601   :  { %v2436_v61 = vpop.eup %2435 }
0x2602   :  { %1665 = vrot.lane.b32.xlu1 %v2436_v61, %s2556_s21 }
0x2674   :  { %v1666_v62 = vpop.permute.xlu1 %1665 }
0x2675   :  { %v1668_v63 = vmul.f32 %v2434_v57, %v1666_v62 }
0x2677   :  { %v1670_v2 = vrot.slane %v1668_v63, 5 }
0x2679   :  { %1671 = vrot.lane.b32.xlu0 %v1670_v2, %s2557_s4 }
0x26eb   :  { %v1672_v25 = vpop.permute.xlu0 %1671 }
0x26ec   :  { %2197 = vmatmul.mubr.msk.f32.vlgmr.msra.gmra.mrb[14].mxu1 %vm75_vm1, %v1672_v25 }
0x27bf   :  { %v1741_v3 = vpop.f32.mrb[14].mxu1 }
0x27c0   :  { %v1746_v4 = vrot.slane %v1741_v3, 2  ;;  %v2198_v5 = vpop.f32.mrb[15].mxu1 }
0x27c2   :  { %v1748_v6 = vadd.f32 %v1746_v4, %v2676_v23 }
0x27c4   :  { %2437 = vtanh.f32 %v1748_v6  ;;  %v1934_v8 = vmul.f32 -1.442695, %v1748_v6 }
0x27c6   :  { %2439 = vpow2.f32 %v1934_v8 }
0x27ce   :  { %v2438_v7 = vpop.eup %2437 }
0x27cf   :  { %1761 = vrot.lane.b32.xlu1 %v2438_v7, %s2556_s21 }
0x27d0   :  { %v2440_v10 = vpop.eup %2439 }
0x27d1   :  { %v1752_v11 = vadd.f32 1.0, %v2440_v10 }
0x27d3   :  { %2441 = vrcp.f32 %v1752_v11 }
0x27dd   :  { %v2442_v12 = vpop.eup %2441 }
0x27de   :  { %v1759_v17 = vmul.f32 %v2442_v12, %v1757_v16 }
0x2841   :  { %v1762_v13 = vpop.permute.xlu1 %1761 }
0x2842   :  { %v1764_v14 = vmul.f32 %v2442_v12, %v1762_v13 }
0x2844   :  { %1766 = vrot.lane.b32.xlu0 %v1764_v14, %s2556_s21 }
0x28b6   :  { %v1767_v18 = vpop.permute.xlu0 %1766 }
0x28b7   :  { %v1769_v19 = vadd.f32 %v1767_v18, %v1759_v17 }
0x28b9   :  { %2443 = vtanh.f32 %v1769_v19  ;;  %v1864_v38 = vrot.slane %v1769_v19, 7 }
0x28c3   :  { %v2444_v20 = vpop.eup %2443 }
0x28c4   :  { %1772 = vrot.lane.b32.xlu1 %v2444_v20, %s2556_s21 }
0x2936   :  { %v1773_v21 = vpop.permute.xlu1 %1772 }
0x2937   :  { %v1775_v22 = vmul.f32 %v2442_v12, %v1773_v21 }
0x2939   :  { %v1777_v24 = vrot.slane %v1775_v22, 6 }
0x293b   :  { %1778 = vrot.lane.b32.xlu0 %v1777_v24, %s2557_s4 }
0x29ad   :  { %v1779_v26 = vpop.permute.xlu0 %1778 }
0x29ae   :  { %2208 = vmatmul.mubr.msk.f32.vlgmr.msra.gmra.mrb[16].mxu0 %vm75_vm1, %v1779_v26 }
0x2a81   :  { %v1848_v27 = vpop.f32.mrb[16].mxu0 }
0x2a82   :  { %v1853_v28 = vrot.slane %v1848_v27, 1  ;;  %v2209_v29 = vpop.f32.mrb[17].mxu0 }
0x2a84   :  { %v1855_v30 = vadd.f32 %v1853_v28, %v2676_v23 }
0x2a86   :  { %2445 = vtanh.f32 %v1855_v30  ;;  %v1936_v32 = vmul.f32 -1.442695, %v1855_v30 }
0x2a88   :  { %2447 = vpow2.f32 %v1936_v32 }
0x2a90   :  { %v2446_v31 = vpop.eup %2445 }
0x2a91   :  { %1868 = vrot.lane.b32.xlu1 %v2446_v31, %s2556_s21 }
0x2a92   :  { %v2448_v33 = vpop.eup %2447 }
0x2a93   :  { %v1859_v34 = vadd.f32 1.0, %v2448_v33 }
0x2a95   :  { %2449 = vrcp.f32 %v1859_v34 }
0x2a9f   :  { %v2450_v35 = vpop.eup %2449 }
0x2aa0   :  { %v1866_v39 = vmul.f32 %v2450_v35, %v1864_v38 }
0x2b03   :  { %v1869_v36 = vpop.permute.xlu1 %1868 }
0x2b04   :  { %v1871_v37 = vmul.f32 %v2450_v35, %v1869_v36 }
0x2b06   :  { %1873 = vrot.lane.b32.xlu0 %v1871_v37, %s2556_s21 }
0x2b78   :  { %v1874_v40 = vpop.permute.xlu0 %1873 }
0x2b79   :  { %v1876_v41 = vadd.f32 %v1874_v40, %v1866_v39 }
0x2b7b   :  { %2451 = vtanh.f32 %v1876_v41 }
0x2b85   :  { %v2452_v23 = vpop.eup %2451 }
0x2b86   :  { %1879 = vrot.lane.b32.xlu1 %v2452_v23, %s2556_s21 }
0x2b8a   :  { %1890 = vrot.lane.b32.xlu1 %v1876_v41, %s2557_s4 }
0x2bf8   :  { %v1880_v42 = vpop.permute.xlu1 %1879 }
0x2bf9   :  { %v1882_v43 = vmul.f32 %v2450_v35, %v1880_v42 }
0x2bfb   :  { %1884 = vrot.lane.b32.xlu0 %v1882_v43, %s2557_s4 }
0x2bfc   :  { %v1891_v45 = vpop.permute.xlu1 %1890 }
0x2c6d   :  { %v1885_v44 = vpop.permute.xlu0 %1884 }
0x2c6e   :  { %1888 = vst.msk [vmem:[%s2865_s6 - $0x7] sm:$0x80] %vm1887_vm2, %v1885_v44 }
0x2c6f   :  { %1894 = vst.msk [vmem:[%s2865_s6 - $0x7] sm:$0x80] %vm1893_vm3, %v1891_v45 }
0x2c70   :  { %1899 = vsyncpa [#allocation4], 1 }
0x2c71   :  { %1900 = vsyncpa [#allocation6], 1 }
0x2c72   :  { %1901 = vsyncpa [#allocation9], 1 }

</bundles_post_ra>
